<compile_context>
chip_gen: v7x
topology: tpu7x:2x2x1
jax: 0.10.0
libtpu: 0.0.40
codegen_flags: <defaults>
</compile_context>

<pallas_src>
import jax
import jax.numpy as jnp
from jax import lax
from jax.experimental import pallas as pl
from jax.experimental.pallas import tpu as pltpu


def conv3x3_stats_kernel(x_ref, w_ref, y_ref, sum_ref, sq_ref, xpad_ref, cols_ref):
    """Per-batch 3x3/pad=1 conv (no bias) + per-batch BN partial statistics.

    x_ref:    (1, H, W, Cin)  f32  NHWC input tile for one batch
    w_ref:    (Cout, 9*Cin)   f32  weights; col index = t*Cin + ci, t = 3*ky + kx
    y_ref:    (1, Cout, H*W)  f32  conv output, channel-major (lane-dense store)
    sum_ref:  (1, Cout, 1)    f32  per-batch channel sum of y
    sq_ref:   (1, Cout, 1)    f32  per-batch channel sum of y^2
    xpad_ref: (H+2, W+2, Cin) f32  VMEM scratch: zero-padded input
    cols_ref: (H*W, 9*Cin)    f32  VMEM scratch: im2col matrix
    """
    _, H, W, Cin = x_ref.shape
    HW = H * W

    # Zero-pad in VMEM (no jnp.pad HBM pass in the wrapper).  Re-initialized every
    # grid step so the kernel stays correct under megacore grid sharding.
    xpad_ref[...] = jnp.zeros_like(xpad_ref)
    xpad_ref[1:H + 1, 1:W + 1, :] = x_ref[0]

    # im2col: lane block t of cols holds the (dy, dx)-shifted window, channels last.
    for t in range(9):                       # statically unrolled taps
        dy, dx = divmod(t, 3)
        cols_ref[:, t * Cin:(t + 1) * Cin] = (
            xpad_ref[dy:dy + H, dx:dx + W, :].reshape(HW, Cin))

    # Single MXU matmul (one result drain), contracting 9*Cin on both operands:
    #   (Cout, 9*Cin) . (H*W, 9*Cin)^T -> (Cout, H*W), f32 accumulation.
    acc = lax.dot_general(
        w_ref[...], cols_ref[...],
        dimension_numbers=(((1,), (1,)), ((), ())),
        preferred_element_type=jnp.float32)

    y_ref[0] = acc                                            # lane-dense store
    sum_ref[0] = jnp.sum(acc, axis=1, keepdims=True)          # (Cout, 1)
    sq_ref[0] = jnp.sum(acc * acc, axis=1, keepdims=True)     # (Cout, 1)


def bn_apply_kernel(y_ref, scale_ref, shift_ref, o_ref):
    """y_ref/o_ref: (1, Cout, H*W); scale/shift: (Cout, 1) folded BN affine."""
    o_ref[0] = y_ref[0] * scale_ref[...] + shift_ref[...]


def single_conv0_forward(x_nchw, conv_w, conv_b, bn_gamma, bn_beta, eps=1e-5):
    """x: (B, Cin, H, W); conv_w: (Cout, Cin, 3, 3); conv_b/gamma/beta: (Cout,).
    Returns (B, Cout, H, W)."""
    B, Cin, H, W = x_nchw.shape
    Cout = conv_w.shape[0]
    HW = H * W
    del conv_b  # cancels exactly under training-mode BatchNorm (see header note)

    # One relayout pass over the smallest tensor only (channels -> lane dim).
    # Padding and the output layout are handled in-kernel.
    x_nhwc = jnp.transpose(x_nchw, (0, 2, 3, 1)).astype(jnp.float32)

    # (Cout, Cin, 3, 3) -> (Cout, 3, 3, Cin) -> (Cout, 9*Cin): col = t*Cin + ci.
    w_lhs = jnp.transpose(conv_w.astype(jnp.float32), (0, 2, 3, 1)).reshape(Cout, 9 * Cin)

    conv_flops = 2 * B * HW * 9 * Cin * Cout
    conv_bytes = (B * HW * Cin + Cout * 9 * Cin + B * Cout * HW + 2 * B * Cout) * 4

    y, psum, psq = pl.pallas_call(
        conv3x3_stats_kernel,
        grid=(B,),
        in_specs=[
            pl.BlockSpec((1, H, W, Cin), lambda b: (b, 0, 0, 0)),
            pl.BlockSpec((Cout, 9 * Cin), lambda b: (0, 0)),
        ],
        out_specs=(
            pl.BlockSpec((1, Cout, HW), lambda b: (b, 0, 0)),
            pl.BlockSpec((1, Cout, 1), lambda b: (b, 0, 0)),
            pl.BlockSpec((1, Cout, 1), lambda b: (b, 0, 0)),
        ),
        out_shape=(
            jax.ShapeDtypeStruct((B, Cout, HW), jnp.float32),
            jax.ShapeDtypeStruct((B, Cout, 1), jnp.float32),
            jax.ShapeDtypeStruct((B, Cout, 1), jnp.float32),
        ),
        scratch_shapes=[
            pltpu.VMEM((H + 2, W + 2, Cin), jnp.float32),   # padded input
            pltpu.VMEM((HW, 9 * Cin), jnp.float32),         # im2col LHS
        ],
        compiler_params=pltpu.CompilerParams(dimension_semantics=("parallel",)),
        cost_estimate=pl.CostEstimate(flops=conv_flops, transcendentals=0,
                                      bytes_accessed=conv_bytes),
    )(x_nhwc, w_lhs)

    # O(Cout)-sized training-mode BatchNorm statistics finalization (plain JAX).
    n = B * HW
    mean = jnp.sum(psum, axis=0) / n                       # (Cout, 1)
    var = jnp.sum(psq, axis=0) / n - mean * mean           # biased variance
    inv_std = lax.rsqrt(var + eps)
    scale = bn_gamma.astype(jnp.float32).reshape(Cout, 1) * inv_std
    shift = bn_beta.astype(jnp.float32).reshape(Cout, 1) - mean * scale

    bn_bytes = (2 * B * Cout * HW + 2 * Cout) * 4
    out_flat = pl.pallas_call(
        bn_apply_kernel,
        grid=(B,),
        in_specs=[
            pl.BlockSpec((1, Cout, HW), lambda b: (b, 0, 0)),
            pl.BlockSpec((Cout, 1), lambda b: (0, 0)),
            pl.BlockSpec((Cout, 1), lambda b: (0, 0)),
        ],
        out_specs=pl.BlockSpec((1, Cout, HW), lambda b: (b, 0, 0)),
        out_shape=jax.ShapeDtypeStruct((B, Cout, HW), jnp.float32),
        input_output_aliases={0: 0},   # normalize y in place (no 2nd HBM buffer)
        compiler_params=pltpu.CompilerParams(dimension_semantics=("parallel",)),
        cost_estimate=pl.CostEstimate(flops=2 * B * Cout * HW, transcendentals=0,
                                      bytes_accessed=bn_bytes),
    )(y, scale, shift)

    # (B, Cout, H*W) -> (B, Cout, H, W): identical linear layout, free bitcast.
    return out_flat.reshape(B, Cout, H, W)


def single_conv0_reference(x_nchw, conv_w, conv_b, bn_gamma, bn_beta, eps=1e-5):
    """Pure-JAX reference mirroring the PyTorch forward (training-mode BN)."""
    y = lax.conv_general_dilated(
        x_nchw.astype(jnp.float32), conv_w.astype(jnp.float32),
        window_strides=(1, 1), padding=((1, 1), (1, 1)),
        dimension_numbers=("NCHW", "OIHW", "NCHW"),
        precision=lax.Precision.HIGHEST)
    y = y + conv_b.reshape(1, -1, 1, 1)
    mean = jnp.mean(y, axis=(0, 2, 3), keepdims=True)
    var = jnp.var(y, axis=(0, 2, 3), keepdims=True)        # biased variance
    y_hat = (y - mean) * lax.rsqrt(var + eps)
    return y_hat * bn_gamma.reshape(1, -1, 1, 1) + bn_beta.reshape(1, -1, 1, 1)


if __name__ == "__main__":
    B, Cin, Cout, H, W = 2, 4, 8, 16, 16

    key = jax.random.PRNGKey(0)
    kx, kw, kb, kg, kbt = jax.random.split(key, 5)
    x = jax.random.normal(kx, (B, Cin, H, W), dtype=jnp.float32)
    conv_w = jax.random.normal(kw, (Cout, Cin, 3, 3), dtype=jnp.float32) * 0.1
    conv_b = jax.random.normal(kb, (Cout,), dtype=jnp.float32) * 0.1
    bn_gamma = 1.0 + 0.2 * jax.random.normal(kg, (Cout,), dtype=jnp.float32)
    bn_beta = 0.1 * jax.random.normal(kbt, (Cout,), dtype=jnp.float32)

    fwd = jax.jit(single_conv0_forward)
    out = jax.block_until_ready(fwd(x, conv_w, conv_b, bn_gamma, bn_beta))

    ref = single_conv0_reference(x, conv_w, conv_b, bn_gamma, bn_beta)
    assert out.shape == (B, Cout, H, W), out.shape
    max_err = float(jnp.max(jnp.abs(out - ref)))
    assert jnp.allclose(out, ref, atol=2e-3, rtol=2e-3), max_err

    print("KERNEL_OK")
</pallas_src>

<mosaic_0001>
module attributes {stable_mosaic.version = 11 : i64} {
  func.func @conv3x3_stats_kernel(%arg0: i32, %arg1: memref<1x16x16x4xf32, #tpu.memory_space<vmem>>, %arg2: memref<8x36xf32, #tpu.memory_space<vmem>>, %arg3: memref<1x8x256xf32, #tpu.memory_space<vmem>>, %arg4: memref<1x8x1xf32, #tpu.memory_space<vmem>>, %arg5: memref<1x8x1xf32, #tpu.memory_space<vmem>>, %arg6: memref<18x18x4xf32, #tpu.memory_space<vmem>>, %arg7: memref<256x36xf32, #tpu.memory_space<vmem>>) attributes {dimension_semantics = [#tpu.dimension_semantics<parallel>], iteration_bounds = array<i64: 2>, scalar_prefetch = 0 : i64, scratch_operands = 2 : i64, tpu.core_type = #tpu.core_type<tc>, window_params = [{transform_indices = @transform_0, window_bounds = array<i64: 1, 16, 16, 4>}, {pipeline_mode = #tpu.pipeline_mode<synchronous>, transform_indices = @transform_1, window_bounds = array<i64: 8, 36>}, {transform_indices = @transform_2, window_bounds = array<i64: 1, 8, 256>}, {transform_indices = @transform_3, window_bounds = array<i64: 1, 8, 1>}, {transform_indices = @transform_4, window_bounds = array<i64: 1, 8, 1>}]} {
    %cst = arith.constant 0.000000e+00 : f32
    %0 = vector.broadcast %cst : f32 to vector<18x18x4xf32>
    %c0 = arith.constant 0 : index
    %c0_0 = arith.constant 0 : index
    %c0_1 = arith.constant 0 : index
    %1 = vector.load %arg6[%c0, %c0_0, %c0_1] : memref<18x18x4xf32, #tpu.memory_space<vmem>>, vector<18x18x4xf32>
    tpu.vector_store %arg6[%c0, %c0_0, %c0_1], %0 {strides = array<i32>} : memref<18x18x4xf32, #tpu.memory_space<vmem>>, vector<18x18x4xf32>,
    %c0_2 = arith.constant 0 : index
    %c0_3 = arith.constant 0 : index
    %c0_4 = arith.constant 0 : index
    %c0_5 = arith.constant 0 : index
    %2 = vector.load %arg1[%c0_2, %c0_3, %c0_4, %c0_5] : memref<1x16x16x4xf32, #tpu.memory_space<vmem>>, vector<1x16x16x4xf32>
    %3 = vector.shape_cast %2 : vector<1x16x16x4xf32> to vector<16x16x4xf32>
    %c1 = arith.constant 1 : index
    %c1_6 = arith.constant 1 : index
    %c0_7 = arith.constant 0 : index
    %4 = vector.load %arg6[%c1, %c1_6, %c0_7] : memref<18x18x4xf32, #tpu.memory_space<vmem>>, vector<16x16x4xf32>
    tpu.vector_store %arg6[%c1, %c1_6, %c0_7], %3 {strides = array<i32>} : memref<18x18x4xf32, #tpu.memory_space<vmem>>, vector<16x16x4xf32>,
    %c0_8 = arith.constant 0 : index
    %c0_9 = arith.constant 0 : index
    %c0_10 = arith.constant 0 : index
    %5 = vector.load %arg6[%c0_8, %c0_9, %c0_10] : memref<18x18x4xf32, #tpu.memory_space<vmem>>, vector<16x16x4xf32>
    %6 = vector.shape_cast %5 : vector<16x16x4xf32> to vector<256x4xf32>
    %c0_11 = arith.constant 0 : index
    %c0_12 = arith.constant 0 : index
    %7 = vector.load %arg7[%c0_11, %c0_12] : memref<256x36xf32, #tpu.memory_space<vmem>>, vector<256x4xf32>
    tpu.vector_store %arg7[%c0_11, %c0_12], %6 {strides = array<i32>} : memref<256x36xf32, #tpu.memory_space<vmem>>, vector<256x4xf32>,
    %c0_13 = arith.constant 0 : index
    %c1_14 = arith.constant 1 : index
    %c0_15 = arith.constant 0 : index
    %8 = vector.load %arg6[%c0_13, %c1_14, %c0_15] : memref<18x18x4xf32, #tpu.memory_space<vmem>>, vector<16x16x4xf32>
    %9 = vector.shape_cast %8 : vector<16x16x4xf32> to vector<256x4xf32>
    %c0_16 = arith.constant 0 : index
    %c4 = arith.constant 4 : index
    %10 = vector.load %arg7[%c0_16, %c4] : memref<256x36xf32, #tpu.memory_space<vmem>>, vector<256x4xf32>
    tpu.vector_store %arg7[%c0_16, %c4], %9 {strides = array<i32>} : memref<256x36xf32, #tpu.memory_space<vmem>>, vector<256x4xf32>,
    %c0_17 = arith.constant 0 : index
    %c2 = arith.constant 2 : index
    %c0_18 = arith.constant 0 : index
    %11 = vector.load %arg6[%c0_17, %c2, %c0_18] : memref<18x18x4xf32, #tpu.memory_space<vmem>>, vector<16x16x4xf32>
    %12 = vector.shape_cast %11 : vector<16x16x4xf32> to vector<256x4xf32>
    %c0_19 = arith.constant 0 : index
    %c8 = arith.constant 8 : index
    %13 = vector.load %arg7[%c0_19, %c8] : memref<256x36xf32, #tpu.memory_space<vmem>>, vector<256x4xf32>
    tpu.vector_store %arg7[%c0_19, %c8], %12 {strides = array<i32>} : memref<256x36xf32, #tpu.memory_space<vmem>>, vector<256x4xf32>,
    %c1_20 = arith.constant 1 : index
    %c0_21 = arith.constant 0 : index
    %c0_22 = arith.constant 0 : index
    %14 = vector.load %arg6[%c1_20, %c0_21, %c0_22] : memref<18x18x4xf32, #tpu.memory_space<vmem>>, vector<16x16x4xf32>
    %15 = vector.shape_cast %14 : vector<16x16x4xf32> to vector<256x4xf32>
    %c0_23 = arith.constant 0 : index
    %c12 = arith.constant 12 : index
    %16 = vector.load %arg7[%c0_23, %c12] : memref<256x36xf32, #tpu.memory_space<vmem>>, vector<256x4xf32>
    tpu.vector_store %arg7[%c0_23, %c12], %15 {strides = array<i32>} : memref<256x36xf32, #tpu.memory_space<vmem>>, vector<256x4xf32>,
    %c1_24 = arith.constant 1 : index
    %c1_25 = arith.constant 1 : index
    %c0_26 = arith.constant 0 : index
    %17 = vector.load %arg6[%c1_24, %c1_25, %c0_26] : memref<18x18x4xf32, #tpu.memory_space<vmem>>, vector<16x16x4xf32>
    %18 = vector.shape_cast %17 : vector<16x16x4xf32> to vector<256x4xf32>
    %c0_27 = arith.constant 0 : index
    %c16 = arith.constant 16 : index
    %19 = vector.load %arg7[%c0_27, %c16] : memref<256x36xf32, #tpu.memory_space<vmem>>, vector<256x4xf32>
    tpu.vector_store %arg7[%c0_27, %c16], %18 {strides = array<i32>} : memref<256x36xf32, #tpu.memory_space<vmem>>, vector<256x4xf32>,
    %c1_28 = arith.constant 1 : index
    %c2_29 = arith.constant 2 : index
    %c0_30 = arith.constant 0 : index
    %20 = vector.load %arg6[%c1_28, %c2_29, %c0_30] : memref<18x18x4xf32, #tpu.memory_space<vmem>>, vector<16x16x4xf32>
    %21 = vector.shape_cast %20 : vector<16x16x4xf32> to vector<256x4xf32>
    %c0_31 = arith.constant 0 : index
    %c20 = arith.constant 20 : index
    %22 = vector.load %arg7[%c0_31, %c20] : memref<256x36xf32, #tpu.memory_space<vmem>>, vector<256x4xf32>
    tpu.vector_store %arg7[%c0_31, %c20], %21 {strides = array<i32>} : memref<256x36xf32, #tpu.memory_space<vmem>>, vector<256x4xf32>,
    %c2_32 = arith.constant 2 : index
    %c0_33 = arith.constant 0 : index
    %c0_34 = arith.constant 0 : index
    %23 = vector.load %arg6[%c2_32, %c0_33, %c0_34] : memref<18x18x4xf32, #tpu.memory_space<vmem>>, vector<16x16x4xf32>
    %24 = vector.shape_cast %23 : vector<16x16x4xf32> to vector<256x4xf32>
    %c0_35 = arith.constant 0 : index
    %c24 = arith.constant 24 : index
    %25 = vector.load %arg7[%c0_35, %c24] : memref<256x36xf32, #tpu.memory_space<vmem>>, vector<256x4xf32>
    tpu.vector_store %arg7[%c0_35, %c24], %24 {strides = array<i32>} : memref<256x36xf32, #tpu.memory_space<vmem>>, vector<256x4xf32>,
    %c2_36 = arith.constant 2 : index
    %c1_37 = arith.constant 1 : index
    %c0_38 = arith.constant 0 : index
    %26 = vector.load %arg6[%c2_36, %c1_37, %c0_38] : memref<18x18x4xf32, #tpu.memory_space<vmem>>, vector<16x16x4xf32>
    %27 = vector.shape_cast %26 : vector<16x16x4xf32> to vector<256x4xf32>
    %c0_39 = arith.constant 0 : index
    %c28 = arith.constant 28 : index
    %28 = vector.load %arg7[%c0_39, %c28] : memref<256x36xf32, #tpu.memory_space<vmem>>, vector<256x4xf32>
    tpu.vector_store %arg7[%c0_39, %c28], %27 {strides = array<i32>} : memref<256x36xf32, #tpu.memory_space<vmem>>, vector<256x4xf32>,
    %c2_40 = arith.constant 2 : index
    %c2_41 = arith.constant 2 : index
    %c0_42 = arith.constant 0 : index
    %29 = vector.load %arg6[%c2_40, %c2_41, %c0_42] : memref<18x18x4xf32, #tpu.memory_space<vmem>>, vector<16x16x4xf32>
    %30 = vector.shape_cast %29 : vector<16x16x4xf32> to vector<256x4xf32>
    %c0_43 = arith.constant 0 : index
    %c32 = arith.constant 32 : index
    %31 = vector.load %arg7[%c0_43, %c32] : memref<256x36xf32, #tpu.memory_space<vmem>>, vector<256x4xf32>
    tpu.vector_store %arg7[%c0_43, %c32], %30 {strides = array<i32>} : memref<256x36xf32, #tpu.memory_space<vmem>>, vector<256x4xf32>,
    %c0_44 = arith.constant 0 : index
    %c0_45 = arith.constant 0 : index
    %32 = vector.load %arg2[%c0_44, %c0_45] : memref<8x36xf32, #tpu.memory_space<vmem>>, vector<8x36xf32>
    %c0_46 = arith.constant 0 : index
    %c0_47 = arith.constant 0 : index
    %33 = vector.load %arg7[%c0_46, %c0_47] : memref<256x36xf32, #tpu.memory_space<vmem>>, vector<256x36xf32>
    %cst_48 = arith.constant dense<0.000000e+00> : vector<8x256xf32>
    %34 = tpu.matmul %32, %33, %cst_48 {dimension_numbers = #tpu.dot_dimension_numbers<[1], [1], [0], [0], [0, 0, 1, 0], [], []>} : vector<8x36xf32>, vector<256x36xf32>, vector<8x256xf32> -> vector<8x256xf32>
    %c0_49 = arith.constant 0 : index
    %c0_50 = arith.constant 0 : index
    %c0_51 = arith.constant 0 : index
    %35 = vector.load %arg3[%c0_49, %c0_50, %c0_51] : memref<1x8x256xf32, #tpu.memory_space<vmem>>, vector<1x8x256xf32>
    %36 = vector.shape_cast %35 : vector<1x8x256xf32> to vector<8x256xf32>
    %37 = vector.shape_cast %34 : vector<8x256xf32> to vector<1x8x256xf32>
    tpu.vector_store %arg3[%c0_49, %c0_50, %c0_51], %37 {strides = array<i32>} : memref<1x8x256xf32, #tpu.memory_space<vmem>>, vector<1x8x256xf32>,
    %cst_52 = arith.constant dense<0.000000e+00> : vector<8xf32>
    %38 = vector.multi_reduction <add>, %34, %cst_52 [1] : vector<8x256xf32> to vector<8xf32>
    %39 = vector.shape_cast %38 : vector<8xf32> to vector<8x1xf32>
    %c0_53 = arith.constant 0 : index
    %c0_54 = arith.constant 0 : index
    %c0_55 = arith.constant 0 : index
    %40 = vector.load %arg4[%c0_53, %c0_54, %c0_55] : memref<1x8x1xf32, #tpu.memory_space<vmem>>, vector<1x8x1xf32>
    %41 = vector.shape_cast %40 : vector<1x8x1xf32> to vector<8x1xf32>
    %42 = vector.shape_cast %39 : vector<8x1xf32> to vector<1x8x1xf32>
    tpu.vector_store %arg4[%c0_53, %c0_54, %c0_55], %42 {strides = array<i32>} : memref<1x8x1xf32, #tpu.memory_space<vmem>>, vector<1x8x1xf32>,
    %43 = arith.mulf %34, %34 : vector<8x256xf32>
    %cst_56 = arith.constant dense<0.000000e+00> : vector<8xf32>
    %44 = vector.multi_reduction <add>, %43, %cst_56 [1] : vector<8x256xf32> to vector<8xf32>
    %45 = vector.shape_cast %44 : vector<8xf32> to vector<8x1xf32>
    %c0_57 = arith.constant 0 : index
    %c0_58 = arith.constant 0 : index
    %c0_59 = arith.constant 0 : index
    %46 = vector.load %arg5[%c0_57, %c0_58, %c0_59] : memref<1x8x1xf32, #tpu.memory_space<vmem>>, vector<1x8x1xf32>
    %47 = vector.shape_cast %46 : vector<1x8x1xf32> to vector<8x1xf32>
    %48 = vector.shape_cast %45 : vector<8x1xf32> to vector<1x8x1xf32>
    tpu.vector_store %arg5[%c0_57, %c0_58, %c0_59], %48 {strides = array<i32>} : memref<1x8x1xf32, #tpu.memory_space<vmem>>, vector<1x8x1xf32>,
    return
  }
  func.func @transform_0(%arg0: i32) -> (i32, i32, i32, i32) {
    %c0_i32 = arith.constant 0 : i32
    %c0_i32_0 = arith.constant 0 : i32
    %c0_i32_1 = arith.constant 0 : i32
    %c0_i32_2 = arith.constant 0 : i32
    return %arg0, %c0_i32, %c0_i32_0, %c0_i32_1 : i32, i32, i32, i32
  }
  func.func @transform_1(%arg0: i32) -> (i32, i32) {
    %c0_i32 = arith.constant 0 : i32
    %c0_i32_0 = arith.constant 0 : i32
    %c0_i32_1 = arith.constant 0 : i32
    return %c0_i32, %c0_i32_0 : i32, i32
  }
  func.func @transform_2(%arg0: i32) -> (i32, i32, i32) {
    %c0_i32 = arith.constant 0 : i32
    %c0_i32_0 = arith.constant 0 : i32
    %c0_i32_1 = arith.constant 0 : i32
    return %arg0, %c0_i32, %c0_i32_0 : i32, i32, i32
  }
  func.func @transform_3(%arg0: i32) -> (i32, i32, i32) {
    %c0_i32 = arith.constant 0 : i32
    %c0_i32_0 = arith.constant 0 : i32
    %c0_i32_1 = arith.constant 0 : i32
    return %arg0, %c0_i32, %c0_i32_0 : i32, i32, i32
  }
  func.func @transform_4(%arg0: i32) -> (i32, i32, i32) {
    %c0_i32 = arith.constant 0 : i32
    %c0_i32_0 = arith.constant 0 : i32
    %c0_i32_1 = arith.constant 0 : i32
    return %arg0, %c0_i32, %c0_i32_0 : i32, i32, i32
  }
}

module attributes {stable_mosaic.version = 11 : i64} {
  func.func @bn_apply_kernel(%arg0: i32, %arg1: memref<1x8x256xf32, #tpu.memory_space<vmem>>, %arg2: memref<8x1xf32, #tpu.memory_space<vmem>>, %arg3: memref<8x1xf32, #tpu.memory_space<vmem>>, %arg4: memref<1x8x256xf32, #tpu.memory_space<vmem>>) attributes {dimension_semantics = [#tpu.dimension_semantics<parallel>], iteration_bounds = array<i64: 2>, scalar_prefetch = 0 : i64, scratch_operands = 0 : i64, tpu.core_type = #tpu.core_type<tc>, window_params = [{transform_indices = @transform_0, window_bounds = array<i64: 1, 8, 256>}, {pipeline_mode = #tpu.pipeline_mode<synchronous>, transform_indices = @transform_1, window_bounds = array<i64: 8, 1>}, {pipeline_mode = #tpu.pipeline_mode<synchronous>, transform_indices = @transform_2, window_bounds = array<i64: 8, 1>}, {transform_indices = @transform_3, window_bounds = array<i64: 1, 8, 256>}]} {
    %c0 = arith.constant 0 : index
    %c0_0 = arith.constant 0 : index
    %c0_1 = arith.constant 0 : index
    %0 = vector.load %arg1[%c0, %c0_0, %c0_1] : memref<1x8x256xf32, #tpu.memory_space<vmem>>, vector<1x8x256xf32>
    %1 = vector.shape_cast %0 : vector<1x8x256xf32> to vector<8x256xf32>
    %c0_2 = arith.constant 0 : index
    %c0_3 = arith.constant 0 : index
    %2 = vector.load %arg2[%c0_2, %c0_3] : memref<8x1xf32, #tpu.memory_space<vmem>>, vector<8x1xf32>
    %3 = vector.broadcast %2 : vector<8x1xf32> to vector<8x256xf32>
    %4 = arith.mulf %1, %3 : vector<8x256xf32>
    %c0_4 = arith.constant 0 : index
    %c0_5 = arith.constant 0 : index
    %5 = vector.load %arg3[%c0_4, %c0_5] : memref<8x1xf32, #tpu.memory_space<vmem>>, vector<8x1xf32>
    %6 = vector.broadcast %5 : vector<8x1xf32> to vector<8x256xf32>
    %7 = arith.addf %4, %6 : vector<8x256xf32>
    %c0_6 = arith.constant 0 : index
    %c0_7 = arith.constant 0 : index
    %c0_8 = arith.constant 0 : index
    %8 = vector.load %arg4[%c0_6, %c0_7, %c0_8] : memref<1x8x256xf32, #tpu.memory_space<vmem>>, vector<1x8x256xf32>
    %9 = vector.shape_cast %8 : vector<1x8x256xf32> to vector<8x256xf32>
    %10 = vector.shape_cast %7 : vector<8x256xf32> to vector<1x8x256xf32>
    tpu.vector_store %arg4[%c0_6, %c0_7, %c0_8], %10 {strides = array<i32>} : memref<1x8x256xf32, #tpu.memory_space<vmem>>, vector<1x8x256xf32>,
    return
  }
  func.func @transform_0(%arg0: i32) -> (i32, i32, i32) {
    %c0_i32 = arith.constant 0 : i32
    %c0_i32_0 = arith.constant 0 : i32
    %c0_i32_1 = arith.constant 0 : i32
    return %arg0, %c0_i32, %c0_i32_0 : i32, i32, i32
  }
  func.func @transform_1(%arg0: i32) -> (i32, i32) {
    %c0_i32 = arith.constant 0 : i32
    %c0_i32_0 = arith.constant 0 : i32
    %c0_i32_1 = arith.constant 0 : i32
    return %c0_i32, %c0_i32_0 : i32, i32
  }
  func.func @transform_2(%arg0: i32) -> (i32, i32) {
    %c0_i32 = arith.constant 0 : i32
    %c0_i32_0 = arith.constant 0 : i32
    %c0_i32_1 = arith.constant 0 : i32
    return %c0_i32, %c0_i32_0 : i32, i32
  }
  func.func @transform_3(%arg0: i32) -> (i32, i32, i32) {
    %c0_i32 = arith.constant 0 : i32
    %c0_i32_0 = arith.constant 0 : i32
    %c0_i32_1 = arith.constant 0 : i32
    return %arg0, %c0_i32, %c0_i32_0 : i32, i32, i32
  }
}

</mosaic_0001>

<bundles_post_ra>
// kernel: single_conv0_forward.3
= control target key start
LH: loop header
LB: loop body
LE: loop exit
PB: predicated region body
PF: predicated region fallthrough
CT: control target
= control target key end

     0   :  { %s298_s12 = smov 0   ;;  %s321_s0 = inlined_call_operand.vmem [shape: f32[2,8,256], index: 0, kind: input, shape index: {}, may-alias: {0,3}]   ;;  %s322_s1 = inlined_call_operand.vmem [shape: f32[8,1], index: 1, kind: input, shape index: {}]   ;;  %s323_s2 = inlined_call_operand.vmem [shape: f32[8,1], index: 2, kind: input, shape index: {}]   ;;  %s324_s3 = inlined_call_operand.vmem [shape: f32[2,8,256], index: 3, kind: output, shape index: {}, may-alias: {0,3}]  }
   0x1 LB: > { %s246_s13 = sadd.s32 4294967295, %s275_s12   ;;  %p250_p0 = scmp.ge.s32.totalorder %s275_s12, 1  ;;  %s275_s12 = sphi %s298_s12, %s13_s12  }
   0x2   : > { %p137_p1 = scmp.lt.s32.totalorder %s275_s12, 3 }
   0x4   : > { %p138_p2 = pnand %p250_p0, %p137_p1 }
   0x5   : > { %v173_v0 = vld [vmem:[%s322_s1] sm:$0xff] (!%p138_p2)  ;;  %v277_v1 = vmov (!%p138_p2), 0   ;;  %p161_p3 = scmp.lt.s32.totalorder (!%p138_p2), %s246_s13, 1 }
   0x6   : > { %141 = sbr.rel (%p138_p2) target bundleno = 142 (0x8e), region = 32  ;;  %268 = vset.pattern.permute.xlu0 (!%p138_p2), %v277_v1  ;;  %v181_v2 = vld [vmem:[%s323_s2] sm:$0xff] (!%p138_p2) }
   0x7   : > { %176 = vperm.xlu0 (!%p138_p2), %268, %v173_v0  }
   0xb   : > { %184 = vperm.xlu0 (!%p138_p2), %268, %v181_v2  }
   0xd   : > { %s326_s13 = smov (!%p161_p3, %s246_s13), 1 }
   0xe   : > { %s257_s18 = sshll.u32 %s326_s13, 4 }
   0xf   : > { %s165_s21 = scalar_lea.vmem %s321_s0, %s257_s18  ;;  %s170_s24 = scalar_lea.vmem %s324_s3, %s257_s18 }
  0x10   : > { %v171_v4 = vld [vmem:[%s165_s21] sm:$0xff]  ;;  %v172_v5 = vld [vmem:[%s165_s21 + $0x8] sm:$0xff] }
  0x86   : > { %v177_v3 = vpop.permute.xlu0 %176 }
  0x87   : > { %v179_v6 = vmul.f32 %v177_v3, %v171_v4  ;;  %v180_v7 = vmul.f32 %v177_v3, %v172_v5 }
  0x8a   : > { %v185_v8 = vpop.permute.xlu0 %184 }
  0x8b   : > { %v187_v9 = vadd.f32 %v185_v8, %v179_v6  ;;  %v188_v10 = vadd.f32 %v185_v8, %v180_v7 }
  0x8d   : > { %189 = vst [vmem:[%s170_s24] sm:$0xff] %v187_v9  ;;  %190 = vst [vmem:[%s170_s24 + $0x8] sm:$0xff] %v188_v10 }
  0x8e PF: > { %s13_s12 = sadd.s32 1, %s275_s12  }
  0x8f   : > { %p10_p4 = scmp.ge.s32.totalorder %s13_s12, 4  }
  0x91   :  { %12 = sbr.rel (!%p10_p4) target bundleno = 1 (0x1), region = 62 }

// kernel: single_conv0_forward.2
= control target key start
LH: loop header
LB: loop body
LE: loop exit
PB: predicated region body
PF: predicated region fallthrough
CT: control target
= control target key end

     0   :  { %s2472_s15 = smov 0   ;;  %s3528_s0 = inlined_call_operand.vmem [shape: f32[2,16,16,4], index: 0, kind: input, shape index: {}]   ;;  %s3529_s1 = inlined_call_operand.vmem [shape: f32[8,36], index: 1, kind: input, shape index: {}]   ;;  %s3530_s2 = inlined_call_operand.vmem [shape: f32[2,8,256], index: 2, kind: output, shape index: {0}]   ;;  %s3531_s3 = inlined_call_operand.vmem [shape: f32[2,8,1], index: 3, kind: output, shape index: {1}]   ;;  %s3532_s4 = inlined_call_operand.vmem [shape: f32[2,8,1], index: 4, kind: output, shape index: {2}]  }
   0x1 LB: > { %s2283_s16 = sadd.s32 4294967295, %s2436_s15   ;;  %p2287_p0 = scmp.ge.s32.totalorder %s2436_s15, 1  ;;  %s2436_s15 = sphi %s2472_s15, %s15_s15  }
   0x2   : > { %p167_p1 = scmp.lt.s32.totalorder %s2436_s15, 3 }
   0x4   : > { %p168_p2 = pnand %p2287_p0, %p167_p1 }
   0x5   : > { %vm219_vm0 = vcmask (!%p168_p2), 31744   ;;  %p2482_p3 = scmp.lt.s32.totalorder (!%p168_p2), %s2283_s16, 1  ;;  %vm222_vm1 = vcmask (!%p168_p2), 25600   ;;  %v2438_v0 = vmov (!%p168_p2), 0.0   ;;  %s2439_s22 = smov (!%p168_p2), 4   ;;  %vm564_vm2 = vcmask (!%p168_p2), 64544  }
   0x6   : > { %171 = sbr.rel (%p168_p2) target bundleno = 1041 (0x411), region = 28  ;;  %220 = vst.msk [vmem:[#allocation2] sm:$0xff] (!%p168_p2), %vm219_vm0, %v2438_v0  ;;  %221 = vst.msk [vmem:[#allocation2 + $0x8] sm:$0xff] (!%p168_p2), %vm219_vm0, %v2438_v0  ;;  %s2440_s23 = smov (!%p168_p2), 8   ;;  %vm757_vm3 = vcmask (!%p168_p2), 97344   ;;  %vm950_vm4 = vcmask (!%p168_p2), 130144  }
   0x7   : > { %224 = vst.msk [vmem:[#allocation2 + $0x18] sm:$0xff] (!%p168_p2), %vm219_vm0, %v2438_v0  ;;  %225 = vst.msk [vmem:[#allocation2 + $0x20] sm:$0xff] (!%p168_p2), %vm219_vm0, %v2438_v0  ;;  %s2441_s24 = smov (!%p168_p2), 12   ;;  %s2442_s25 = smov (!%p168_p2), 16   ;;  %vm1143_vm5 = vcmask (!%p168_p2), 162944   ;;  %vm1336_vm6 = vcmask (!%p168_p2), 195744  }
   0x8   : > { %227 = vst.msk [vmem:[#allocation2 + $0x30] sm:$0xff] (!%p168_p2), %vm219_vm0, %v2438_v0  ;;  %228 = vst.msk [vmem:[#allocation2 + $0x38] sm:$0xff] (!%p168_p2), %vm219_vm0, %v2438_v0  ;;  %s2443_s26 = smov (!%p168_p2), 20   ;;  %s2444_s27 = smov (!%p168_p2), 24   ;;  %vm1530_vm7 = vcmask (!%p168_p2), 228544   ;;  %vm1723_vm8 = vcmask (!%p168_p2), 261344  }
   0x9   : > { %230 = vst.msk [vmem:[#allocation2 + $0x48] sm:$0xff] (!%p168_p2), %vm219_vm0, %v2438_v0  ;;  %231 = vst.msk [vmem:[#allocation2 + $0x50] sm:$0xff] (!%p168_p2), %vm219_vm0, %v2438_v0  ;;  %s2445_s28 = smov (!%p168_p2), 28   ;;  %s2446_s29 = smov (!%p168_p2), 32   ;;  %vm1916_vm9 = vcmask (!%p168_p2), 294144   ;;  %vm1982_vm10 = vcmask (!%p168_p2), 293888  }
   0xa   : > { %233 = vst.msk [vmem:[#allocation2 + $0x60] sm:$0xff] (!%p168_p2), %vm219_vm0, %v2438_v0  ;;  %234 = vst.msk [vmem:[#allocation2 + $0x68] sm:$0xff] (!%p168_p2), %vm219_vm0, %v2438_v0  ;;  %vm2158_vm12 = vcmask (!%p168_p2), 7168  }
   0xb   : > { %236 = vst.msk [vmem:[#allocation2 + $0x78] sm:$0xff] (!%p168_p2), %vm219_vm0, %v2438_v0  ;;  %237 = vst.msk [vmem:[#allocation2 + $0x80] sm:$0xff] (!%p168_p2), %vm219_vm0, %v2438_v0 }
   0xc   : > { %239 = vst.msk [vmem:[#allocation2 + $0x90] sm:$0xff] (!%p168_p2), %vm219_vm0, %v2438_v0  ;;  %240 = vst.msk [vmem:[#allocation2 + $0x98] sm:$0xff] (!%p168_p2), %vm219_vm0, %v2438_v0 }
   0xd   : > { %242 = vst.msk [vmem:[#allocation2 + $0xa8] sm:$0xff] %vm219_vm0, %v2438_v0  ;;  %243 = vst.msk [vmem:[#allocation2 + $0xb0] sm:$0xff] %vm219_vm0, %v2438_v0  ;;  %s3537_s16 = smov (!%p2482_p3, %s2283_s16), 1  ;;  %v404_v7 = vld [vmem:[#allocation2 + $0x1] sm:$0xff] }
   0xe   : > { %245 = vst.msk [vmem:[#allocation2 + $0xc0] sm:$0xff] %vm219_vm0, %v2438_v0  ;;  %246 = vst.msk [vmem:[#allocation2 + $0xc8] sm:$0xff] %vm219_vm0, %v2438_v0  ;;  %s2329_s18 = sshll.u32 %s3537_s16, 8  ;;  %468 = vrot.lane.b32.xlu0 %v404_v7, %s2439_s22  ;;  %v340_v50 = vld [vmem:[#allocation2] sm:$0xff]  ;;  %v341_v51 = vld [vmem:[#allocation2 + $0x8] sm:$0xff]  ;;  %s2330_s6 = sshll.u32 %s3537_s16, 4 }
   0xf   : > { %248 = vst.msk [vmem:[#allocation2 + $0xd8] sm:$0xff] %vm219_vm0, %v2438_v0  ;;  %249 = vst.msk [vmem:[#allocation2 + $0xe0] sm:$0xff] %vm219_vm0, %v2438_v0  ;;  %s2550_s21 = scalar_lea.vmem %s3528_s0, %s2329_s18  ;;  %s210_s9 = scalar_lea.vmem %s3530_s2, %s2330_s6 }
  0x10   : > { %251 = vst.msk [vmem:[#allocation2 + $0xf0] sm:$0xff] %vm219_vm0, %v2438_v0  ;;  %252 = vst.msk [vmem:[#allocation2 + $0xf8] sm:$0xff] %vm219_vm0, %v2438_v0  ;;  %v275_v1 = vld [vmem:[%s2550_s21] sm:$0xff]  ;;  %v276_v2 = vld [vmem:[%s2550_s21 + $0x8] sm:$0xff]  ;;  %s2292_s10 = sshll.u32 %s3537_s16, 3 }
  0x11   : > { %254 = vst.msk [vmem:[#allocation2 + $0x108] sm:$0xff] %vm219_vm0, %v2438_v0  ;;  %255 = vst.msk [vmem:[#allocation2 + $0x110] sm:$0xff] %vm219_vm0, %v2438_v0  ;;  %v277_v3 = vld [vmem:[%s2550_s21 + $0x10] sm:$0xff]  ;;  %v278_v4 = vld [vmem:[%s2550_s21 + $0x18] sm:$0xff]  ;;  %s214_s13 = scalar_lea.vmem %s3531_s3, %s2292_s10  ;;  %s218_s18 = scalar_lea.vmem %s3532_s4, %s2292_s10 }
  0x12   : > { %257 = vst.msk [vmem:[#allocation2 + $0x120] sm:$0xff] %vm219_vm0, %v2438_v0  ;;  %258 = vst.msk [vmem:[#allocation2 + $0x128] sm:$0xff] %vm219_vm0, %v2438_v0  ;;  %v279_v5 = vld [vmem:[%s2550_s21 + $0x20] sm:$0xff]  ;;  %v280_v6 = vld [vmem:[%s2550_s21 + $0x28] sm:$0xff] }
  0x13   : > { %260 = vst.msk [vmem:[#allocation2 + $0x138] sm:$0xff] %vm219_vm0, %v2438_v0  ;;  %261 = vst.msk [vmem:[#allocation2 + $0x140] sm:$0xff] %vm219_vm0, %v2438_v0  ;;  %v281_v9 = vld [vmem:[%s2550_s21 + $0x30] sm:$0xff]  ;;  %v282_v10 = vld [vmem:[%s2550_s21 + $0x38] sm:$0xff] }
  0x14   : > { %263 = vst.msk [vmem:[#allocation2 + $0x150] sm:$0xff] %vm219_vm0, %v2438_v0  ;;  %264 = vst.msk [vmem:[#allocation2 + $0x158] sm:$0xff] %vm219_vm0, %v2438_v0  ;;  %v283_v11 = vld [vmem:[%s2550_s21 + $0x40] sm:$0xff]  ;;  %v284_v12 = vld [vmem:[%s2550_s21 + $0x48] sm:$0xff] }
  0x15   : > { %266 = vst.msk [vmem:[#allocation2 + $0x168] sm:$0xff] %vm219_vm0, %v2438_v0  ;;  %267 = vst.msk [vmem:[#allocation2 + $0x170] sm:$0xff] %vm219_vm0, %v2438_v0  ;;  %v285_v13 = vld [vmem:[%s2550_s21 + $0x50] sm:$0xff]  ;;  %v286_v14 = vld [vmem:[%s2550_s21 + $0x58] sm:$0xff] }
  0x16   : > { %269 = vst.msk [vmem:[#allocation2 + $0x180] sm:$0xff] %vm219_vm0, %v2438_v0  ;;  %270 = vst.msk [vmem:[#allocation2 + $0x188] sm:$0xff] %vm219_vm0, %v2438_v0  ;;  %v287_v15 = vld [vmem:[%s2550_s21 + $0x60] sm:$0xff]  ;;  %v288_v16 = vld [vmem:[%s2550_s21 + $0x68] sm:$0xff] }
  0x17   : > { %272 = vst.msk [vmem:[#allocation2 + $0x198] sm:$0xff] %vm219_vm0, %v2438_v0  ;;  %273 = vst.msk [vmem:[#allocation2 + $0x1a0] sm:$0xff] %vm219_vm0, %v2438_v0  ;;  %v289_v17 = vld [vmem:[%s2550_s21 + $0x70] sm:$0xff]  ;;  %v290_v18 = vld [vmem:[%s2550_s21 + $0x78] sm:$0xff] }
  0x18   : > { %223 = vst.msk [vmem:[#allocation2 + $0x10] sm:$0x3] %vm222_vm1, %v2438_v0  ;;  %226 = vst.msk [vmem:[#allocation2 + $0x28] sm:$0x3] %vm222_vm1, %v2438_v0  ;;  %v291_v19 = vld [vmem:[%s2550_s21 + $0x80] sm:$0xff]  ;;  %v292_v20 = vld [vmem:[%s2550_s21 + $0x88] sm:$0xff] }
  0x19   : > { %229 = vst.msk [vmem:[#allocation2 + $0x40] sm:$0x3] %vm222_vm1, %v2438_v0  ;;  %232 = vst.msk [vmem:[#allocation2 + $0x58] sm:$0x3] %vm222_vm1, %v2438_v0  ;;  %v293_v21 = vld [vmem:[%s2550_s21 + $0x90] sm:$0xff]  ;;  %v294_v22 = vld [vmem:[%s2550_s21 + $0x98] sm:$0xff] }
  0x1a   : > { %235 = vst.msk [vmem:[#allocation2 + $0x70] sm:$0x3] %vm222_vm1, %v2438_v0  ;;  %238 = vst.msk [vmem:[#allocation2 + $0x88] sm:$0x3] %vm222_vm1, %v2438_v0  ;;  %v295_v23 = vld [vmem:[%s2550_s21 + $0xa0] sm:$0xff]  ;;  %v296_v24 = vld [vmem:[%s2550_s21 + $0xa8] sm:$0xff] }
  0x1b   : > { %241 = vst.msk [vmem:[#allocation2 + $0xa0] sm:$0x3] %vm222_vm1, %v2438_v0  ;;  %244 = vst.msk [vmem:[#allocation2 + $0xb8] sm:$0x3] %vm222_vm1, %v2438_v0  ;;  %v297_v28 = vld [vmem:[%s2550_s21 + $0xb0] sm:$0xff]  ;;  %v298_v29 = vld [vmem:[%s2550_s21 + $0xb8] sm:$0xff] }
  0x1c   : > { %247 = vst.msk [vmem:[#allocation2 + $0xd0] sm:$0x3] %vm222_vm1, %v2438_v0  ;;  %250 = vst.msk [vmem:[#allocation2 + $0xe8] sm:$0x3] %vm222_vm1, %v2438_v0  ;;  %v299_v33 = vld [vmem:[%s2550_s21 + $0xc0] sm:$0xff]  ;;  %v300_v34 = vld [vmem:[%s2550_s21 + $0xc8] sm:$0xff] }
  0x1d   : > { %253 = vst.msk [vmem:[#allocation2 + $0x100] sm:$0x3] %vm222_vm1, %v2438_v0  ;;  %256 = vst.msk [vmem:[#allocation2 + $0x118] sm:$0x3] %vm222_vm1, %v2438_v0  ;;  %v301_v35 = vld [vmem:[%s2550_s21 + $0xd0] sm:$0xff]  ;;  %v302_v36 = vld [vmem:[%s2550_s21 + $0xd8] sm:$0xff] }
  0x1e   : > { %259 = vst.msk [vmem:[#allocation2 + $0x130] sm:$0x3] %vm222_vm1, %v2438_v0  ;;  %262 = vst.msk [vmem:[#allocation2 + $0x148] sm:$0x3] %vm222_vm1, %v2438_v0  ;;  %v303_v37 = vld [vmem:[%s2550_s21 + $0xe0] sm:$0xff]  ;;  %v304_v38 = vld [vmem:[%s2550_s21 + $0xe8] sm:$0xff] }
  0x1f   : > { %265 = vst.msk [vmem:[#allocation2 + $0x160] sm:$0x3] %vm222_vm1, %v2438_v0  ;;  %268 = vst.msk [vmem:[#allocation2 + $0x178] sm:$0x3] %vm222_vm1, %v2438_v0  ;;  %v405_v8 = vld [vmem:[#allocation2 + $0x9] sm:$0xff] }
  0x20   : > { %271 = vst.msk [vmem:[#allocation2 + $0x190] sm:$0x3] %vm222_vm1, %v2438_v0  ;;  %274 = vst.msk [vmem:[#allocation2 + $0x1a8] sm:$0x3] %vm222_vm1, %v2438_v0  ;;  %470 = vrot.lane.b32.xlu0 %v405_v8, %s2439_s22 }
  0x21   : > { %308 = vst.msk [vmem:[#allocation2 + $0x19] sm:$0xff] %vm219_vm0, %v275_v1  ;;  %309 = vst.msk [vmem:[#allocation2 + $0x21] sm:$0xff] %vm219_vm0, %v276_v2 }
  0x22   : > { %310 = vst.msk [vmem:[#allocation2 + $0x31] sm:$0xff] %vm219_vm0, %v277_v3  ;;  %311 = vst.msk [vmem:[#allocation2 + $0x39] sm:$0xff] %vm219_vm0, %v278_v4 }
  0x23   : > { %312 = vst.msk [vmem:[#allocation2 + $0x49] sm:$0xff] %vm219_vm0, %v279_v5  ;;  %313 = vst.msk [vmem:[#allocation2 + $0x51] sm:$0xff] %vm219_vm0, %v280_v6 }
  0x24   : > { %314 = vst.msk [vmem:[#allocation2 + $0x61] sm:$0xff] %vm219_vm0, %v281_v9  ;;  %315 = vst.msk [vmem:[#allocation2 + $0x69] sm:$0xff] %vm219_vm0, %v282_v10 }
  0x25   : > { %316 = vst.msk [vmem:[#allocation2 + $0x79] sm:$0xff] %vm219_vm0, %v283_v11  ;;  %317 = vst.msk [vmem:[#allocation2 + $0x81] sm:$0xff] %vm219_vm0, %v284_v12 }
  0x26   : > { %318 = vst.msk [vmem:[#allocation2 + $0x91] sm:$0xff] %vm219_vm0, %v285_v13  ;;  %319 = vst.msk [vmem:[#allocation2 + $0x99] sm:$0xff] %vm219_vm0, %v286_v14 }
  0x27   : > { %320 = vst.msk [vmem:[#allocation2 + $0xa9] sm:$0xff] %vm219_vm0, %v287_v15  ;;  %321 = vst.msk [vmem:[#allocation2 + $0xb1] sm:$0xff] %vm219_vm0, %v288_v16 }
  0x28   : > { %322 = vst.msk [vmem:[#allocation2 + $0xc1] sm:$0xff] %vm219_vm0, %v289_v17  ;;  %323 = vst.msk [vmem:[#allocation2 + $0xc9] sm:$0xff] %vm219_vm0, %v290_v18  ;;  %v2595_v25 = vld [vmem:[#allocation2 + $0x19] sm:$0xff]  ;;  %v2604_v27 = vld [vmem:[#allocation2 + $0x21] sm:$0xff] }
  0x29   : > { %324 = vst.msk [vmem:[#allocation2 + $0xd9] sm:$0xff] %vm219_vm0, %v291_v19  ;;  %325 = vst.msk [vmem:[#allocation2 + $0xe1] sm:$0xff] %vm219_vm0, %v292_v20  ;;  %v2597_v26 = vld [vmem:[#allocation2 + $0x31] sm:$0xff]  ;;  %472 = vrot.lane.b32.xlu1 %v2595_v25, %s2439_s22  ;;  %v2616_v31 = vld [vmem:[#allocation2 + $0x39] sm:$0xff] }
  0x2a   : > { %326 = vst.msk [vmem:[#allocation2 + $0xf1] sm:$0xff] %vm219_vm0, %v293_v21  ;;  %327 = vst.msk [vmem:[#allocation2 + $0xf9] sm:$0xff] %vm219_vm0, %v294_v22  ;;  %476 = vrot.lane.b32.xlu0 %v2597_v26, %s2439_s22  ;;  %v2612_v30 = vld [vmem:[#allocation2 + $0x49] sm:$0xff]  ;;  %v2633_v39 = vld [vmem:[#allocation2 + $0x51] sm:$0xff] }
  0x2b   : > { %328 = vst.msk [vmem:[#allocation2 + $0x109] sm:$0xff] %vm219_vm0, %v295_v23  ;;  %329 = vst.msk [vmem:[#allocation2 + $0x111] sm:$0xff] %vm219_vm0, %v296_v24  ;;  %v2620_v32 = vld [vmem:[#allocation2 + $0x61] sm:$0xff]  ;;  %v2642_v41 = vld [vmem:[#allocation2 + $0x69] sm:$0xff] }
  0x2c   : > { %330 = vst.msk [vmem:[#allocation2 + $0x121] sm:$0xff] %vm219_vm0, %v297_v28  ;;  %331 = vst.msk [vmem:[#allocation2 + $0x129] sm:$0xff] %vm219_vm0, %v298_v29  ;;  %v414_v40 = vld [vmem:[#allocation2 + $0x79] sm:$0xff]  ;;  %v415_v43 = vld [vmem:[#allocation2 + $0x81] sm:$0xff] }
  0x2d   : > { %474 = vrot.lane.b32.xlu1 %v2604_v27, %s2439_s22  ;;  %332 = vst.msk [vmem:[#allocation2 + $0x139] sm:$0xff] %vm219_vm0, %v299_v33  ;;  %333 = vst.msk [vmem:[#allocation2 + $0x141] sm:$0xff] %vm219_vm0, %v300_v34  ;;  %v416_v42 = vld [vmem:[#allocation2 + $0x91] sm:$0xff]  ;;  %v417_v47 = vld [vmem:[#allocation2 + $0x99] sm:$0xff] }
  0x2e   : > { %480 = vrot.lane.b32.xlu0 %v2612_v30, %s2439_s22  ;;  %334 = vst.msk [vmem:[#allocation2 + $0x151] sm:$0xff] %vm219_vm0, %v301_v35  ;;  %335 = vst.msk [vmem:[#allocation2 + $0x159] sm:$0xff] %vm219_vm0, %v302_v36  ;;  %v418_v44 = vld [vmem:[#allocation2 + $0xa9] sm:$0xff]  ;;  %v2652_v48 = vld [vmem:[#allocation2 + $0x18] sm:$0xff] }
  0x2f   : > { %336 = vst.msk [vmem:[#allocation2 + $0x169] sm:$0xff] %vm219_vm0, %v303_v37  ;;  %337 = vst.msk [vmem:[#allocation2 + $0x171] sm:$0xff] %vm219_vm0, %v304_v38  ;;  %v2654_v49 = vld [vmem:[#allocation2 + $0x20] sm:$0xff]  ;;  %v2666_v52 = vld [vmem:[#allocation2 + $0x30] sm:$0xff] }
  0x30   : > { %v2648_v45 = vld [vmem:[#allocation2 + $0xd8] sm:$0xff]  ;;  %v2650_v46 = vld [vmem:[#allocation2 + $0xe0] sm:$0xff]  ;;  %372 = vst.msk [vmem:[#allocation3] sm:$0xff] %vm219_vm0, %v340_v50  ;;  %374 = vst.msk [vmem:[#allocation3 + $0x10] sm:$0xff] %vm219_vm0, %v2652_v48 }
  0x31   : > { %478 = vrot.lane.b32.xlu1 %v2616_v31, %s2439_s22  ;;  %390 = vst.msk [vmem:[#allocation3 + $0x90] sm:$0xff] %vm219_vm0, %v2648_v45  ;;  %391 = vst.msk [vmem:[#allocation3 + $0x98] sm:$0xff] %vm219_vm0, %v2650_v46  ;;  %v2668_v53 = vld [vmem:[#allocation2 + $0x38] sm:$0xff]  ;;  %v420_v54 = vld [vmem:[#allocation2 + $0xc1] sm:$0xff] }
  0x32   : > { %484 = vrot.lane.b32.xlu0 %v2620_v32, %s2439_s22  ;;  %375 = vst.msk [vmem:[#allocation3 + $0x18] sm:$0xff] %vm219_vm0, %v2654_v49  ;;  %373 = vst.msk [vmem:[#allocation3 + $0x8] sm:$0xff] %vm219_vm0, %v341_v51  ;;  %v2675_v55 = vld [vmem:[#allocation2 + $0x48] sm:$0xff]  ;;  %v2677_v56 = vld [vmem:[#allocation2 + $0x50] sm:$0xff] }
  0x33   : > { %376 = vst.msk [vmem:[#allocation3 + $0x20] sm:$0xff] %vm219_vm0, %v2666_v52  ;;  %377 = vst.msk [vmem:[#allocation3 + $0x28] sm:$0xff] %vm219_vm0, %v2668_v53  ;;  %v2679_v57 = vld [vmem:[#allocation2 + $0xf0] sm:$0xff]  ;;  %v2686_v58 = vld [vmem:[#allocation2 + $0xf8] sm:$0xff] }
  0x34   : > { %378 = vst.msk [vmem:[#allocation3 + $0x30] sm:$0xff] %vm219_vm0, %v2675_v55  ;;  %379 = vst.msk [vmem:[#allocation3 + $0x38] sm:$0xff] %vm219_vm0, %v2677_v56  ;;  %v2688_v59 = vld [vmem:[#allocation2 + $0x60] sm:$0xff]  ;;  %v2690_v60 = vld [vmem:[#allocation2 + $0x68] sm:$0xff] }
  0x35   : > { %482 = vrot.lane.b32.xlu1 %v2633_v39, %s2439_s22  ;;  %392 = vst.msk [vmem:[#allocation3 + $0xa0] sm:$0xff] %vm219_vm0, %v2679_v57  ;;  %380 = vst.msk [vmem:[#allocation3 + $0x40] sm:$0xff] %vm219_vm0, %v2688_v59  ;;  %v2698_v61 = vld [vmem:[#allocation2 + $0x78] sm:$0xff]  ;;  %v2700_v62 = vld [vmem:[#allocation2 + $0x80] sm:$0xff] }
  0x36   : > { %488 = vrot.lane.b32.xlu0 %v414_v40, %s2439_s22  ;;  %381 = vst.msk [vmem:[#allocation3 + $0x48] sm:$0xff] %vm219_vm0, %v2690_v60  ;;  %v2702_v63 = vld [vmem:[#allocation2 + $0x90] sm:$0xff]  ;;  %393 = vst.msk [vmem:[#allocation3 + $0xa8] sm:$0xff] %vm219_vm0, %v2686_v58  ;;  %v2713_v0 = vld [vmem:[#allocation2 + $0x98] sm:$0xff] }
  0x37   : > { %382 = vst.msk [vmem:[#allocation3 + $0x50] sm:$0xff] %vm219_vm0, %v2698_v61  ;;  %383 = vst.msk [vmem:[#allocation3 + $0x58] sm:$0xff] %vm219_vm0, %v2700_v62  ;;  %v354_v1 = vld [vmem:[#allocation2 + $0xa8] sm:$0xff]  ;;  %v355_v2 = vld [vmem:[#allocation2 + $0xb0] sm:$0xff] }
  0x38   : > { %384 = vst.msk [vmem:[#allocation3 + $0x60] sm:$0xff] %vm219_vm0, %v2702_v63  ;;  %v419_v3 = vld [vmem:[#allocation2 + $0xb1] sm:$0xff]  ;;  %385 = vst.msk [vmem:[#allocation3 + $0x68] sm:$0xff] %vm219_vm0, %v2713_v0  ;;  %v356_v4 = vld [vmem:[#allocation2 + $0xc0] sm:$0xff] }
  0x39   : > { %486 = vrot.lane.b32.xlu1 %v2642_v41, %s2439_s22  ;;  %386 = vst.msk [vmem:[#allocation3 + $0x70] sm:$0xff] %vm219_vm0, %v354_v1  ;;  %387 = vst.msk [vmem:[#allocation3 + $0x78] sm:$0xff] %vm219_vm0, %v355_v2  ;;  %v357_v5 = vld [vmem:[#allocation2 + $0xc8] sm:$0xff]  ;;  %v2721_v6 = vld [vmem:[#allocation2 + $0xd9] sm:$0xff] }
  0x3a   : > { %492 = vrot.lane.b32.xlu0 %v416_v42, %s2439_s22  ;;  %388 = vst.msk [vmem:[#allocation3 + $0x80] sm:$0xff] %vm219_vm0, %v356_v4  ;;  %389 = vst.msk [vmem:[#allocation3 + $0x88] sm:$0xff] %vm219_vm0, %v357_v5  ;;  %v2725_v7 = vld [vmem:[#allocation2 + $0x108] sm:$0xff]  ;;  %v2727_v8 = vld [vmem:[#allocation2 + $0x110] sm:$0xff] }
  0x3b   : > { %v421_v9 = vld [vmem:[#allocation2 + $0xc9] sm:$0xff]  ;;  %394 = vst.msk [vmem:[#allocation3 + $0xb0] sm:$0xff] %vm219_vm0, %v2725_v7  ;;  %395 = vst.msk [vmem:[#allocation3 + $0xb8] sm:$0xff] %vm219_vm0, %v2727_v8  ;;  %v2735_v10 = vld [vmem:[#allocation2 + $0xf1] sm:$0xff] }
  0x3c   : > { %v2738_v11 = vld [vmem:[#allocation2 + $0x120] sm:$0xff]  ;;  %v2740_v12 = vld [vmem:[#allocation2 + $0x128] sm:$0xff]  ;;  %v2754_v15 = vld [vmem:[#allocation2 + $0x138] sm:$0xff] }
  0x3d   : > { %490 = vrot.lane.b32.xlu1 %v415_v43, %s2439_s22  ;;  %v2742_v13 = vld [vmem:[#allocation2 + $0xe1] sm:$0xff]  ;;  %396 = vst.msk [vmem:[#allocation3 + $0xc0] sm:$0xff] %vm219_vm0, %v2738_v11  ;;  %397 = vst.msk [vmem:[#allocation3 + $0xc8] sm:$0xff] %vm219_vm0, %v2740_v12  ;;  %v2750_v14 = vld [vmem:[#allocation2 + $0x109] sm:$0xff] }
  0x3e   : > { %496 = vrot.lane.b32.xlu0 %v418_v44, %s2439_s22  ;;  %v2756_v16 = vld [vmem:[#allocation2 + $0x140] sm:$0xff]  ;;  %398 = vst.msk [vmem:[#allocation3 + $0xd0] sm:$0xff] %vm219_vm0, %v2754_v15  ;;  %v2770_v19 = vld [vmem:[#allocation2 + $0x150] sm:$0xff]  ;;  %v2772_v20 = vld [vmem:[#allocation2 + $0x158] sm:$0xff] }
  0x3f   : > { %v2758_v17 = vld [vmem:[#allocation2 + $0xf9] sm:$0xff]  ;;  %399 = vst.msk [vmem:[#allocation3 + $0xd8] sm:$0xff] %vm219_vm0, %v2756_v16  ;;  %v2766_v18 = vld [vmem:[#allocation2 + $0x121] sm:$0xff]  ;;  %v2774_v21 = vld [vmem:[#allocation2 + $0x111] sm:$0xff] }
  0x40   : > { %400 = vst.msk [vmem:[#allocation3 + $0xe0] sm:$0xff] %vm219_vm0, %v2770_v19  ;;  %401 = vst.msk [vmem:[#allocation3 + $0xe8] sm:$0xff] %vm219_vm0, %v2772_v20  ;;  %v2782_v22 = vld [vmem:[#allocation2 + $0x139] sm:$0xff]  ;;  %v2786_v23 = vld [vmem:[#allocation2 + $0x168] sm:$0xff] }
  0x41   : > { %494 = vrot.lane.b32.xlu1 %v417_v47, %s2439_s22  ;;  %v2788_v24 = vld [vmem:[#allocation2 + $0x170] sm:$0xff]  ;;  %402 = vst.msk [vmem:[#allocation3 + $0xf0] sm:$0xff] %vm219_vm0, %v2786_v23  ;;  %v2800_v33 = vld [vmem:[#allocation2 + $0x141] sm:$0xff]  ;;  %v433_v35 = vld [vmem:[#allocation2 + $0x159] sm:$0xff] }
  0x42   : > { %500 = vrot.lane.b32.xlu0 %v420_v54, %s2439_s22  ;;  %v2790_v28 = vld [vmem:[#allocation2 + $0x129] sm:$0xff]  ;;  %403 = vst.msk [vmem:[#allocation3 + $0xf8] sm:$0xff] %vm219_vm0, %v2788_v24  ;;  %v432_v29 = vld [vmem:[#allocation2 + $0x151] sm:$0xff]  ;;  %v599_v38 = vld [vmem:[#allocation2 + $0x1a] sm:$0xff] }
  0x43   : > { %v434_v34 = vld [vmem:[#allocation2 + $0x169] sm:$0xff]  ;;  %v435_v37 = vld [vmem:[#allocation2 + $0x171] sm:$0xff]  ;;  %v2821_v47 = vld [vmem:[#allocation2 + $0x3a] sm:$0xff] }
  0x44   : > { %v597_v36 = vld [vmem:[#allocation2 + $0x2] sm:$0xff]  ;;  %v598_v40 = vld [vmem:[#allocation2 + $0xa] sm:$0xff]  ;;  %v2810_v42 = vld [vmem:[#allocation2 + $0x32] sm:$0xff] }
  0x45   : > { %498 = vrot.lane.b32.xlu1 %v419_v3, %s2439_s22  ;;  %v2813_v43 = vld [vmem:[#allocation2 + $0x22] sm:$0xff]  ;;  %v2817_v44 = vld [vmem:[#allocation2 + $0x4a] sm:$0xff]  ;;  %v2829_v51 = vld [vmem:[#allocation2 + $0x52] sm:$0xff] }
  0x46   : > { %504 = vrot.lane.b32.xlu0 %v2721_v6, %s2439_s22  ;;  %v2825_v50 = vld [vmem:[#allocation2 + $0x62] sm:$0xff]  ;;  %v2833_v54 = vld [vmem:[#allocation2 + $0x7a] sm:$0xff]  ;;  %v2837_v1 = vld [vmem:[#allocation2 + $0x6a] sm:$0xff] }
  0x47   : > { %v609_v2 = vld [vmem:[#allocation2 + $0x92] sm:$0xff]  ;;  %v2843_v3 = vld [vmem:[#allocation2 + $0x82] sm:$0xff]  ;;  %v611_v4 = vld [vmem:[#allocation2 + $0xaa] sm:$0xff] }
  0x48   : > { %v610_v5 = vld [vmem:[#allocation2 + $0x9a] sm:$0xff]  ;;  %vm3109_vm11 = vmpackc.low %vm1982_vm10, %vm1982_vm10 }
  0x49   : > { %502 = vrot.lane.b32.xlu1 %v421_v9, %s2439_s22  ;;  %v613_v9 = vld [vmem:[#allocation2 + $0xc2] sm:$0xff] }
  0x4a   : > { %508 = vrot.lane.b32.xlu0 %v2735_v10, %s2439_s22 }
  0x4d   : > { %506 = vrot.lane.b32.xlu1 %v2742_v13, %s2439_s22 }
  0x4e   : > { %512 = vrot.lane.b32.xlu0 %v2750_v14, %s2439_s22 }
  0x51   : > { %510 = vrot.lane.b32.xlu1 %v2758_v17, %s2439_s22 }
  0x52   : > { %516 = vrot.lane.b32.xlu0 %v2766_v18, %s2439_s22 }
  0x55   : > { %514 = vrot.lane.b32.xlu1 %v2774_v21, %s2439_s22 }
  0x56   : > { %520 = vrot.lane.b32.xlu0 %v2782_v22, %s2439_s22 }
  0x59   : > { %518 = vrot.lane.b32.xlu1 %v2790_v28, %s2439_s22 }
  0x5a   : > { %524 = vrot.lane.b32.xlu0 %v432_v29, %s2439_s22  ;;  %v612_v29 = vld [vmem:[#allocation2 + $0xb2] sm:$0xff] }
  0x5d   : > { %522 = vrot.lane.b32.xlu1 %v2800_v33, %s2439_s22 }
  0x5e   : > { %528 = vrot.lane.b32.xlu0 %v434_v34, %s2439_s22  ;;  %v615_v34 = vld [vmem:[#allocation2 + $0xda] sm:$0xff] }
  0x61   : > { %526 = vrot.lane.b32.xlu1 %v433_v35, %s2439_s22  ;;  %v614_v35 = vld [vmem:[#allocation2 + $0xca] sm:$0xff] }
  0x62   : > { %661 = vrot.lane.b32.xlu0 %v597_v36, %s2440_s23  ;;  %v616_v36 = vld [vmem:[#allocation2 + $0xe2] sm:$0xff] }
  0x65   : > { %530 = vrot.lane.b32.xlu1 %v435_v37, %s2439_s22 }
  0x66   : > { %665 = vrot.lane.b32.xlu0 %v599_v38, %s2440_s23 }
  0x69   : > { %663 = vrot.lane.b32.xlu1 %v598_v40, %s2440_s23 }
  0x6a   : > { %669 = vrot.lane.b32.xlu0 %v2810_v42, %s2440_s23 }
  0x6d   : > { %667 = vrot.lane.b32.xlu1 %v2813_v43, %s2440_s23 }
  0x6e   : > { %673 = vrot.lane.b32.xlu0 %v2817_v44, %s2440_s23 }
  0x71   : > { %671 = vrot.lane.b32.xlu1 %v2821_v47, %s2440_s23 }
  0x72   : > { %677 = vrot.lane.b32.xlu0 %v2825_v50, %s2440_s23 }
  0x75   : > { %675 = vrot.lane.b32.xlu1 %v2829_v51, %s2440_s23 }
  0x76   : > { %681 = vrot.lane.b32.xlu0 %v2833_v54, %s2440_s23 }
  0x79   : > { %679 = vrot.lane.b32.xlu1 %v2837_v1, %s2440_s23 }
  0x7a   : > { %685 = vrot.lane.b32.xlu0 %v609_v2, %s2440_s23 }
  0x7d   : > { %683 = vrot.lane.b32.xlu1 %v2843_v3, %s2440_s23 }
  0x7e   : > { %689 = vrot.lane.b32.xlu0 %v611_v4, %s2440_s23  ;;  %v2901_v4 = vld [vmem:[#allocation2 + $0xf2] sm:$0xff] }
  0x80   : > { %v469_v37 = vpop.permute.xlu0 %468 }
  0x81   : > { %687 = vrot.lane.b32.xlu1 %v610_v5, %s2440_s23  ;;  %565 = vst.msk [vmem:[#allocation3] sm:$0xff] %vm564_vm2, %v469_v37 }
  0x82   : > { %693 = vrot.lane.b32.xlu0 %v613_v9, %s2440_s23 }
  0x85   : > { %691 = vrot.lane.b32.xlu1 %v612_v29, %s2440_s23 }
  0x86   : > { %697 = vrot.lane.b32.xlu0 %v615_v34, %s2440_s23 }
  0x89   : > { %695 = vrot.lane.b32.xlu1 %v614_v35, %s2440_s23 }
  0x8a   : > { %886 = vrot.lane.b32.xlu0 %v2648_v45, %s2441_s24 }
  0x8d   : > { %699 = vrot.lane.b32.xlu1 %v616_v36, %s2440_s23 }
  0x8e   : > { %854 = vrot.lane.b32.xlu0 %v2652_v48, %s2441_s24 }
  0x91   : > { %888 = vrot.lane.b32.xlu1 %v2650_v46, %s2441_s24 }
  0x92   : > { %1079 = vrot.lane.b32.xlu0 %v2721_v6, %s2442_s25  ;;  %v471_v45 = vpop.permute.xlu0 %470 }
  0x93   : > { %566 = vst.msk [vmem:[#allocation3 + $0x8] sm:$0xff] %vm564_vm2, %v471_v45 }
  0x95   : > { %856 = vrot.lane.b32.xlu1 %v2654_v49, %s2441_s24 }
  0x96   : > { %1047 = vrot.lane.b32.xlu0 %v2595_v25, %s2442_s25 }
  0x99   : > { %1081 = vrot.lane.b32.xlu1 %v2742_v13, %s2442_s25 }
  0x9a   : > { %1272 = vrot.lane.b32.xlu0 %v615_v34, %s2443_s26  ;;  %v2911_v34 = vld [vmem:[#allocation2 + $0xfa] sm:$0xff] }
  0x9b   : > { %v473_v46 = vpop.permute.xlu1 %472 }
  0x9c   : > { %567 = vst.msk [vmem:[#allocation3 + $0x10] sm:$0xff] %vm564_vm2, %v473_v46  ;;  %v477_v48 = vpop.permute.xlu0 %476 }
  0x9d   : > { %1049 = vrot.lane.b32.xlu1 %v2604_v27, %s2442_s25  ;;  %569 = vst.msk [vmem:[#allocation3 + $0x20] sm:$0xff] %vm564_vm2, %v477_v48 }
  0x9e   : > { %1240 = vrot.lane.b32.xlu0 %v599_v38, %s2443_s26 }
  0x9f   : > { %v475_v49 = vpop.permute.xlu1 %474 }
  0xa0   : > { %568 = vst.msk [vmem:[#allocation3 + $0x18] sm:$0xff] %vm564_vm2, %v475_v49  ;;  %v481_v25 = vpop.permute.xlu0 %480 }
  0xa1   : > { %1274 = vrot.lane.b32.xlu1 %v616_v36, %s2443_s26  ;;  %571 = vst.msk [vmem:[#allocation3 + $0x30] sm:$0xff] %vm564_vm2, %v481_v25 }
  0xa2   : > { %1466 = vrot.lane.b32.xlu0 %v2679_v57, %s2444_s27 }
  0xa3   : > { %v479_v6 = vpop.permute.xlu1 %478 }
  0xa4   : > { %570 = vst.msk [vmem:[#allocation3 + $0x28] sm:$0xff] %vm564_vm2, %v479_v6  ;;  %v485_v27 = vpop.permute.xlu0 %484 }
  0xa5   : > { %1242 = vrot.lane.b32.xlu1 %v2813_v43, %s2443_s26  ;;  %573 = vst.msk [vmem:[#allocation3 + $0x40] sm:$0xff] %vm564_vm2, %v485_v27 }
  0xa6   : > { %1434 = vrot.lane.b32.xlu0 %v2666_v52, %s2444_s27 }
  0xa7   : > { %v483_v13 = vpop.permute.xlu1 %482 }
  0xa8   : > { %572 = vst.msk [vmem:[#allocation3 + $0x38] sm:$0xff] %vm564_vm2, %v483_v13  ;;  %v489_v38 = vpop.permute.xlu0 %488 }
  0xa9   : > { %1468 = vrot.lane.b32.xlu1 %v2686_v58, %s2444_s27  ;;  %575 = vst.msk [vmem:[#allocation3 + $0x50] sm:$0xff] %vm564_vm2, %v489_v38  ;;  %v2977_v38 = vld [vmem:[#allocation2 + $0x10a] sm:$0xff] }
  0xaa   : > { %1659 = vrot.lane.b32.xlu0 %v2735_v10, %s2445_s28 }
  0xab   : > { %v487_v40 = vpop.permute.xlu1 %486 }
  0xac   : > { %574 = vst.msk [vmem:[#allocation3 + $0x48] sm:$0xff] %vm564_vm2, %v487_v40  ;;  %v493_v43 = vpop.permute.xlu0 %492 }
  0xad   : > { %1436 = vrot.lane.b32.xlu1 %v2668_v53, %s2444_s27  ;;  %577 = vst.msk [vmem:[#allocation3 + $0x60] sm:$0xff] %vm564_vm2, %v493_v43 }
  0xae   : > { %1627 = vrot.lane.b32.xlu0 %v2597_v26, %s2445_s28 }
  0xaf   : > { %v491_v2 = vpop.permute.xlu1 %490 }
  0xb0   : > { %576 = vst.msk [vmem:[#allocation3 + $0x58] sm:$0xff] %vm564_vm2, %v491_v2  ;;  %v497_v5 = vpop.permute.xlu0 %496 }
  0xb1   : > { %1661 = vrot.lane.b32.xlu1 %v2758_v17, %s2445_s28  ;;  %579 = vst.msk [vmem:[#allocation3 + $0x70] sm:$0xff] %vm564_vm2, %v497_v5  ;;  %v2987_v5 = vld [vmem:[#allocation2 + $0x112] sm:$0xff] }
  0xb2   : > { %1852 = vrot.lane.b32.xlu0 %v2901_v4, %s2446_s29 }
  0xb3   : > { %v495_v9 = vpop.permute.xlu1 %494 }
  0xb4   : > { %578 = vst.msk [vmem:[#allocation3 + $0x68] sm:$0xff] %vm564_vm2, %v495_v9  ;;  %v501_v29 = vpop.permute.xlu0 %500 }
  0xb5   : > { %1629 = vrot.lane.b32.xlu1 %v2616_v31, %s2445_s28  ;;  %581 = vst.msk [vmem:[#allocation3 + $0x80] sm:$0xff] %vm564_vm2, %v501_v29 }
  0xb6   : > { %1820 = vrot.lane.b32.xlu0 %v2810_v42, %s2446_s29 }
  0xb7   : > { %v499_v35 = vpop.permute.xlu1 %498 }
  0xb8   : > { %580 = vst.msk [vmem:[#allocation3 + $0x78] sm:$0xff] %vm564_vm2, %v499_v35  ;;  %v505_v36 = vpop.permute.xlu0 %504 }
  0xb9   : > { %1854 = vrot.lane.b32.xlu1 %v2911_v34, %s2446_s29  ;;  %583 = vst.msk [vmem:[#allocation3 + $0x90] sm:$0xff] %vm564_vm2, %v505_v36 }
  0xba   : > { %890 = vrot.lane.b32.xlu0 %v2679_v57, %s2441_s24 }
  0xbb   : > { %v503_v37 = vpop.permute.xlu1 %502 }
  0xbc   : > { %582 = vst.msk [vmem:[#allocation3 + $0x88] sm:$0xff] %vm564_vm2, %v503_v37  ;;  %v509_v45 = vpop.permute.xlu0 %508 }
  0xbd   : > { %1822 = vrot.lane.b32.xlu1 %v2821_v47, %s2446_s29  ;;  %585 = vst.msk [vmem:[#allocation3 + $0xa0] sm:$0xff] %vm564_vm2, %v509_v45 }
  0xbe   : > { %858 = vrot.lane.b32.xlu0 %v2666_v52, %s2441_s24 }
  0xbf   : > { %v507_v46 = vpop.permute.xlu1 %506 }
  0xc0   : > { %584 = vst.msk [vmem:[#allocation3 + $0x98] sm:$0xff] %vm564_vm2, %v507_v46  ;;  %v513_v48 = vpop.permute.xlu0 %512 }
  0xc1   : > { %892 = vrot.lane.b32.xlu1 %v2686_v58, %s2441_s24  ;;  %587 = vst.msk [vmem:[#allocation3 + $0xb0] sm:$0xff] %vm564_vm2, %v513_v48 }
  0xc2   : > { %1083 = vrot.lane.b32.xlu0 %v2735_v10, %s2442_s25 }
  0xc3   : > { %v511_v57 = vpop.permute.xlu1 %510 }
  0xc4   : > { %586 = vst.msk [vmem:[#allocation3 + $0xa8] sm:$0xff] %vm564_vm2, %v511_v57  ;;  %v517_v49 = vpop.permute.xlu0 %516 }
  0xc5   : > { %860 = vrot.lane.b32.xlu1 %v2668_v53, %s2441_s24  ;;  %589 = vst.msk [vmem:[#allocation3 + $0xc0] sm:$0xff] %vm564_vm2, %v517_v49 }
  0xc6   : > { %1051 = vrot.lane.b32.xlu0 %v2597_v26, %s2442_s25 }
  0xc7   : > { %v515_v52 = vpop.permute.xlu1 %514 }
  0xc8   : > { %588 = vst.msk [vmem:[#allocation3 + $0xb8] sm:$0xff] %vm564_vm2, %v515_v52  ;;  %v521_v58 = vpop.permute.xlu0 %520 }
  0xc9   : > { %1085 = vrot.lane.b32.xlu1 %v2758_v17, %s2442_s25  ;;  %591 = vst.msk [vmem:[#allocation3 + $0xd0] sm:$0xff] %vm564_vm2, %v521_v58  ;;  %v3059_v58 = vld [vmem:[#allocation2 + $0x122] sm:$0xff] }
  0xca   : > { %1276 = vrot.lane.b32.xlu0 %v2901_v4, %s2443_s26 }
  0xcb   : > { %v519_v10 = vpop.permute.xlu1 %518 }
  0xcc   : > { %590 = vst.msk [vmem:[#allocation3 + $0xc8] sm:$0xff] %vm564_vm2, %v519_v10  ;;  %v525_v53 = vpop.permute.xlu0 %524 }
  0xcd   : > { %1053 = vrot.lane.b32.xlu1 %v2616_v31, %s2442_s25  ;;  %593 = vst.msk [vmem:[#allocation3 + $0xe0] sm:$0xff] %vm564_vm2, %v525_v53 }
  0xce   : > { %1244 = vrot.lane.b32.xlu0 %v2810_v42, %s2443_s26 }
  0xcf   : > { %v523_v26 = vpop.permute.xlu1 %522 }
  0xd0   : > { %592 = vst.msk [vmem:[#allocation3 + $0xd8] sm:$0xff] %vm564_vm2, %v523_v26  ;;  %v529_v17 = vpop.permute.xlu0 %528  ;;  %v3069_v26 = vld [vmem:[#allocation2 + $0x12a] sm:$0xff] }
  0xd1   : > { %1278 = vrot.lane.b32.xlu1 %v2911_v34, %s2443_s26  ;;  %595 = vst.msk [vmem:[#allocation3 + $0xf0] sm:$0xff] %vm564_vm2, %v529_v17 }
  0xd2   : > { %1470 = vrot.lane.b32.xlu0 %v2725_v7, %s2444_s27 }
  0xd3   : > { %v527_v25 = vpop.permute.xlu1 %526 }
  0xd4   : > { %594 = vst.msk [vmem:[#allocation3 + $0xe8] sm:$0xff] %vm564_vm2, %v527_v25  ;;  %v662_v31 = vpop.permute.xlu0 %661 }
  0xd5   : > { %1246 = vrot.lane.b32.xlu1 %v2821_v47, %s2443_s26  ;;  %758 = vst.msk [vmem:[#allocation3] sm:$0xff] %vm757_vm3, %v662_v31 }
  0xd6   : > { %1438 = vrot.lane.b32.xlu0 %v2675_v55, %s2444_s27 }
  0xd7   : > { %v531_v42 = vpop.permute.xlu1 %530 }
  0xd8   : > { %596 = vst.msk [vmem:[#allocation3 + $0xf8] sm:$0xff] %vm564_vm2, %v531_v42  ;;  %v666_v6 = vpop.permute.xlu0 %665 }
  0xd9   : > { %1472 = vrot.lane.b32.xlu1 %v2727_v8, %s2444_s27  ;;  %760 = vst.msk [vmem:[#allocation3 + $0x10] sm:$0xff] %vm757_vm3, %v666_v6 }
  0xda   : > { %1663 = vrot.lane.b32.xlu0 %v2750_v14, %s2445_s28 }
  0xdb   : > { %v664_v27 = vpop.permute.xlu1 %663 }
  0xdc   : > { %759 = vst.msk [vmem:[#allocation3 + $0x8] sm:$0xff] %vm757_vm3, %v664_v27  ;;  %v670_v47 = vpop.permute.xlu0 %669 }
  0xdd   : > { %1440 = vrot.lane.b32.xlu1 %v2677_v56, %s2444_s27  ;;  %762 = vst.msk [vmem:[#allocation3 + $0x20] sm:$0xff] %vm757_vm3, %v670_v47 }
  0xde   : > { %1631 = vrot.lane.b32.xlu0 %v2612_v30, %s2445_s28 }
  0xdf   : > { %v668_v13 = vpop.permute.xlu1 %667 }
  0xe0   : > { %761 = vst.msk [vmem:[#allocation3 + $0x18] sm:$0xff] %vm757_vm3, %v668_v13  ;;  %v674_v40 = vpop.permute.xlu0 %673  ;;  %v989_v13 = vld [vmem:[#allocation2 + $0x61] sm:$0xff] }
  0xe1   : > { %1665 = vrot.lane.b32.xlu1 %v2774_v21, %s2445_s28  ;;  %764 = vst.msk [vmem:[#allocation3 + $0x30] sm:$0xff] %vm757_vm3, %v674_v40  ;;  %v990_v40 = vld [vmem:[#allocation2 + $0x69] sm:$0xff] }
  0xe2   : > { %1856 = vrot.lane.b32.xlu0 %v2977_v38, %s2446_s29 }
  0xe3   : > { %v672_v43 = vpop.permute.xlu1 %671 }
  0xe4   : > { %763 = vst.msk [vmem:[#allocation3 + $0x28] sm:$0xff] %vm757_vm3, %v672_v43  ;;  %v678_v2 = vpop.permute.xlu0 %677 }
  0xe5   : > { %1633 = vrot.lane.b32.xlu1 %v2633_v39, %s2445_s28  ;;  %766 = vst.msk [vmem:[#allocation3 + $0x40] sm:$0xff] %vm757_vm3, %v678_v2 }
  0xe6   : > { %1824 = vrot.lane.b32.xlu0 %v2817_v44, %s2446_s29 }
  0xe7   : > { %v676_v9 = vpop.permute.xlu1 %675 }
  0xe8   : > { %765 = vst.msk [vmem:[#allocation3 + $0x38] sm:$0xff] %vm757_vm3, %v676_v9  ;;  %v682_v29 = vpop.permute.xlu0 %681 }
  0xe9   : > { %1858 = vrot.lane.b32.xlu1 %v2987_v5, %s2446_s29  ;;  %768 = vst.msk [vmem:[#allocation3 + $0x50] sm:$0xff] %vm757_vm3, %v682_v29 }
  0xea   : > { %701 = vrot.lane.b32.xlu0 %v2901_v4, %s2440_s23 }
  0xeb   : > { %v680_v35 = vpop.permute.xlu1 %679 }
  0xec   : > { %767 = vst.msk [vmem:[#allocation3 + $0x48] sm:$0xff] %vm757_vm3, %v680_v35  ;;  %v686_v36 = vpop.permute.xlu0 %685 }
  0xed   : > { %1826 = vrot.lane.b32.xlu1 %v2829_v51, %s2446_s29  ;;  %770 = vst.msk [vmem:[#allocation3 + $0x60] sm:$0xff] %vm757_vm3, %v686_v36 }
  0xee   : > { %894 = vrot.lane.b32.xlu0 %v2725_v7, %s2441_s24 }
  0xef   : > { %v684_v37 = vpop.permute.xlu1 %683 }
  0xf0   : > { %769 = vst.msk [vmem:[#allocation3 + $0x58] sm:$0xff] %vm757_vm3, %v684_v37  ;;  %v690_v45 = vpop.permute.xlu0 %689 }
  0xf1   : > { %703 = vrot.lane.b32.xlu1 %v2911_v34, %s2440_s23  ;;  %772 = vst.msk [vmem:[#allocation3 + $0x70] sm:$0xff] %vm757_vm3, %v690_v45 }
  0xf2   : > { %862 = vrot.lane.b32.xlu0 %v2675_v55, %s2441_s24 }
  0xf3   : > { %v688_v4 = vpop.permute.xlu1 %687 }
  0xf4   : > { %771 = vst.msk [vmem:[#allocation3 + $0x68] sm:$0xff] %vm757_vm3, %v688_v4  ;;  %v694_v46 = vpop.permute.xlu0 %693 }
  0xf5   : > { %896 = vrot.lane.b32.xlu1 %v2727_v8, %s2441_s24  ;;  %774 = vst.msk [vmem:[#allocation3 + $0x80] sm:$0xff] %vm757_vm3, %v694_v46 }
  0xf6   : > { %1087 = vrot.lane.b32.xlu0 %v2750_v14, %s2442_s25 }
  0xf7   : > { %v692_v7 = vpop.permute.xlu1 %691 }
  0xf8   : > { %773 = vst.msk [vmem:[#allocation3 + $0x78] sm:$0xff] %vm757_vm3, %v692_v7  ;;  %v698_v34 = vpop.permute.xlu0 %697 }
  0xf9   : > { %864 = vrot.lane.b32.xlu1 %v2677_v56, %s2441_s24  ;;  %776 = vst.msk [vmem:[#allocation3 + $0x90] sm:$0xff] %vm757_vm3, %v698_v34 }
  0xfa   : > { %1055 = vrot.lane.b32.xlu0 %v2612_v30, %s2442_s25 }
  0xfb   : > { %v696_v55 = vpop.permute.xlu1 %695 }
  0xfc   : > { %775 = vst.msk [vmem:[#allocation3 + $0x88] sm:$0xff] %vm757_vm3, %v696_v55  ;;  %v887_v8 = vpop.permute.xlu0 %886 }
  0xfd   : > { %1089 = vrot.lane.b32.xlu1 %v2774_v21, %s2442_s25  ;;  %967 = vst.msk [vmem:[#allocation3 + $0x80] sm:$0xff] %vm950_vm4, %v887_v8  ;;  %v3148_v8 = vld [vmem:[#allocation2 + $0x13a] sm:$0xff] }
  0xfe   : > { %1280 = vrot.lane.b32.xlu0 %v2977_v38, %s2443_s26 }
  0xff   : > { %v700_v14 = vpop.permute.xlu1 %699 }
 0x100   : > { %777 = vst.msk [vmem:[#allocation3 + $0x98] sm:$0xff] %vm757_vm3, %v700_v14  ;;  %v855_v56 = vpop.permute.xlu0 %854  ;;  %v1570_v14 = vld [vmem:[#allocation2 + $0x81] sm:$0xff] }
 0x101   : > { %1057 = vrot.lane.b32.xlu1 %v2633_v39, %s2442_s25  ;;  %951 = vst.msk [vmem:[#allocation3] sm:$0xff] %vm950_vm4, %v855_v56 }
 0x102   : > { %1248 = vrot.lane.b32.xlu0 %v2817_v44, %s2443_s26 }
 0x103   : > { %v889_v30 = vpop.permute.xlu1 %888 }
 0x104   : > { %968 = vst.msk [vmem:[#allocation3 + $0x88] sm:$0xff] %vm950_vm4, %v889_v30  ;;  %v1080_v21 = vpop.permute.xlu0 %1079 }
 0x105   : > { %1282 = vrot.lane.b32.xlu1 %v2987_v5, %s2443_s26  ;;  %1160 = vst.msk [vmem:[#allocation3 + $0x80] sm:$0xff] %vm1143_vm5, %v1080_v21  ;;  %v3157_v21 = vld [vmem:[#allocation2 + $0x142] sm:$0xff] }
 0x106   : > { %1474 = vrot.lane.b32.xlu0 %v2738_v11, %s2444_s27 }
 0x107   : > { %v857_v48 = vpop.permute.xlu1 %856 }
 0x108   : > { %952 = vst.msk [vmem:[#allocation3 + $0x8] sm:$0xff] %vm950_vm4, %v857_v48  ;;  %v1048_v39 = vpop.permute.xlu0 %1047 }
 0x109   : > { %1250 = vrot.lane.b32.xlu1 %v2829_v51, %s2443_s26  ;;  %1144 = vst.msk [vmem:[#allocation3] sm:$0xff] %vm1143_vm5, %v1048_v39 }
 0x10a   : > { %1442 = vrot.lane.b32.xlu0 %v2688_v59, %s2444_s27 }
 0x10b   : > { %v1082_v44 = vpop.permute.xlu1 %1081 }
 0x10c   : > { %1161 = vst.msk [vmem:[#allocation3 + $0x88] sm:$0xff] %vm1143_vm5, %v1082_v44  ;;  %v1273_v57 = vpop.permute.xlu0 %1272  ;;  %v305_v44 = vld [vmem:[%s2550_s21 + $0xf0] sm:$0xff] }
 0x10d   : > { %1476 = vrot.lane.b32.xlu1 %v2740_v12, %s2444_s27  ;;  %1353 = vst.msk [vmem:[#allocation3 + $0x80] sm:$0xff] %vm1336_vm6, %v1273_v57  ;;  %v306_v57 = vld [vmem:[%s2550_s21 + $0xf8] sm:$0xff] }
 0x10e   : > { %1667 = vrot.lane.b32.xlu0 %v2766_v18, %s2445_s28  ;;  %338 = vst.msk [vmem:[#allocation2 + $0x181] sm:$0xff] %vm219_vm0, %v305_v44  ;;  %339 = vst.msk [vmem:[#allocation2 + $0x189] sm:$0xff] %vm219_vm0, %v306_v57 }
 0x10f   : > { %v1050_v49 = vpop.permute.xlu1 %1049 }
 0x110   : > { %1145 = vst.msk [vmem:[#allocation3 + $0x8] sm:$0xff] %vm1143_vm5, %v1050_v49  ;;  %v1241_v51 = vpop.permute.xlu0 %1240 }
 0x111   : > { %1444 = vrot.lane.b32.xlu1 %v2690_v60, %s2444_s27  ;;  %1337 = vst.msk [vmem:[#allocation3] sm:$0xff] %vm1336_vm6, %v1241_v51 }
 0x112   : > { %1635 = vrot.lane.b32.xlu0 %v2620_v32, %s2445_s28 }
 0x113   : > { %v1275_v52 = vpop.permute.xlu1 %1274 }
 0x114   : > { %1354 = vst.msk [vmem:[#allocation3 + $0x88] sm:$0xff] %vm1336_vm6, %v1275_v52  ;;  %v1467_v10 = vpop.permute.xlu0 %1466  ;;  %v1007_v52 = vld [vmem:[#allocation2 + $0x139] sm:$0xff] }
 0x115   : > { %1669 = vrot.lane.b32.xlu1 %v2790_v28, %s2445_s28  ;;  %1547 = vst.msk [vmem:[#allocation3 + $0x80] sm:$0xff] %vm1530_vm7, %v1467_v10 }
 0x116   : > { %1860 = vrot.lane.b32.xlu0 %v3059_v58, %s2446_s29 }
 0x117   : > { %v1243_v53 = vpop.permute.xlu1 %1242 }
 0x118   : > { %1338 = vst.msk [vmem:[#allocation3 + $0x8] sm:$0xff] %vm1336_vm6, %v1243_v53  ;;  %v1435_v32 = vpop.permute.xlu0 %1434 }
 0x119   : > { %1637 = vrot.lane.b32.xlu1 %v2642_v41, %s2445_s28  ;;  %1531 = vst.msk [vmem:[#allocation3] sm:$0xff] %vm1530_vm7, %v1435_v32 }
 0x11a   : > { %1828 = vrot.lane.b32.xlu0 %v2825_v50, %s2446_s29 }
 0x11b   : > { %v1469_v17 = vpop.permute.xlu1 %1468 }
 0x11c   : > { %1548 = vst.msk [vmem:[#allocation3 + $0x88] sm:$0xff] %vm1530_vm7, %v1469_v17  ;;  %v1660_v25 = vpop.permute.xlu0 %1659 }
 0x11d   : > { %1862 = vrot.lane.b32.xlu1 %v3069_v26, %s2446_s29  ;;  %1740 = vst.msk [vmem:[#allocation3 + $0x80] sm:$0xff] %vm1723_vm8, %v1660_v25 }
 0x11e   : > { %705 = vrot.lane.b32.xlu0 %v2977_v38, %s2440_s23 }
 0x11f   : > { %v1437_v31 = vpop.permute.xlu1 %1436 }
 0x120   : > { %1532 = vst.msk [vmem:[#allocation3 + $0x8] sm:$0xff] %vm1530_vm7, %v1437_v31  ;;  %v1628_v41 = vpop.permute.xlu0 %1627 }
 0x121   : > { %1830 = vrot.lane.b32.xlu1 %v2837_v1, %s2446_s29  ;;  %1724 = vst.msk [vmem:[#allocation3] sm:$0xff] %vm1723_vm8, %v1628_v41 }
 0x122   : > { %898 = vrot.lane.b32.xlu0 %v2738_v11, %s2441_s24 }
 0x123   : > { %v1662_v42 = vpop.permute.xlu1 %1661 }
 0x124   : > { %1741 = vst.msk [vmem:[#allocation3 + $0x88] sm:$0xff] %vm1723_vm8, %v1662_v42  ;;  %v1853_v6 = vpop.permute.xlu0 %1852  ;;  %v1184_v42 = vld [vmem:[#allocation2 + $0x7a] sm:$0xff] }
 0x125   : > { %707 = vrot.lane.b32.xlu1 %v2987_v5, %s2440_s23  ;;  %1933 = vst.msk [vmem:[#allocation3 + $0x80] sm:$0xff] %vm1916_vm9, %v1853_v6 }
 0x126   : > { %866 = vrot.lane.b32.xlu0 %v2688_v59, %s2441_s24 }
 0x127   : > { %v1630_v27 = vpop.permute.xlu1 %1629 }
 0x128   : > { %1725 = vst.msk [vmem:[#allocation3 + $0x8] sm:$0xff] %vm1723_vm8, %v1630_v27  ;;  %v1821_v47 = vpop.permute.xlu0 %1820 }
 0x129   : > { %900 = vrot.lane.b32.xlu1 %v2740_v12, %s2441_s24  ;;  %1917 = vst.msk [vmem:[#allocation3] sm:$0xff] %vm1916_vm9, %v1821_v47 }
 0x12a   : > { %1091 = vrot.lane.b32.xlu0 %v2766_v18, %s2442_s25 }
 0x12b   : > { %v1855_v11 = vpop.permute.xlu1 %1854 }
 0x12c   : > { %1934 = vst.msk [vmem:[#allocation3 + $0x88] sm:$0xff] %vm1916_vm9, %v1855_v11  ;;  %v891_v38 = vpop.permute.xlu0 %890  ;;  %v1966_v12 = vld [vmem:[#allocation3 + $0x80] sm:$0xff]  ;;  %v1185_v11 = vld [vmem:[#allocation2 + $0x82] sm:$0xff] }
 0x12d   : > { %868 = vrot.lane.b32.xlu1 %v2690_v60, %s2441_s24  ;;  %969 = vst.msk [vmem:[#allocation3 + $0x90] sm:$0xff] %vm950_vm4, %v891_v38 }
 0x12e   : > { %1059 = vrot.lane.b32.xlu0 %v989_v13, %s2442_s25 }
 0x12f   : > { %v1823_v59 = vpop.permute.xlu1 %1822 }
 0x130   : > { %1918 = vst.msk [vmem:[#allocation3 + $0x8] sm:$0xff] %vm1916_vm9, %v1823_v59  ;;  %v859_v18 = vpop.permute.xlu0 %858 }
 0x131   : > { %1093 = vrot.lane.b32.xlu1 %v2790_v28, %s2442_s25  ;;  %953 = vst.msk [vmem:[#allocation3 + $0x10] sm:$0xff] %vm950_vm4, %v859_v18  ;;  %v1950_v28 = vld [vmem:[#allocation3] sm:$0xff] }
 0x132   : > { %1284 = vrot.lane.b32.xlu0 %v3059_v58, %s2443_s26 }
 0x133   : > { %v893_v43 = vpop.permute.xlu1 %892  ;;  %v1967_v2 = vld [vmem:[#allocation3 + $0x88] sm:$0xff] }
 0x134   : > { %970 = vst.msk [vmem:[#allocation3 + $0x98] sm:$0xff] %vm950_vm4, %v893_v43  ;;  %v2365_v5 = vpack.c.bf16 %v1967_v2, %v1966_v12  ;;  %v1084_v9 = vpop.permute.xlu0 %1083  ;;  %v1587_v12 = vld [vmem:[#allocation2 + $0x151] sm:$0xff] }
 0x135   : > { %1061 = vrot.lane.b32.xlu1 %v990_v40, %s2442_s25  ;;  %1162 = vst.msk [vmem:[#allocation3 + $0x90] sm:$0xff] %vm1143_vm5, %v1084_v9  ;;  %v1571_v43 = vld [vmem:[#allocation2 + $0x91] sm:$0xff] }
 0x136   : > { %2367 = vmatprep.subr.msk.bf16.mxu0 %vm3109_vm11, %v2365_v5  ;;  %1252 = vrot.lane.b32.xlu0 %v2825_v50, %s2443_s26 }
 0x137   : > { %v861_v29 = vpop.permute.xlu1 %860  ;;  %v1951_v35 = vld [vmem:[#allocation3 + $0x8] sm:$0xff] }
 0x138   : > { %954 = vst.msk [vmem:[#allocation3 + $0x18] sm:$0xff] %vm950_vm4, %v861_v29  ;;  %v2368_v36 = vpack.c.bf16 %v1951_v35, %v1950_v28  ;;  %v1052_v37 = vpop.permute.xlu0 %1051  ;;  %v3229_v28 = vld [vmem:[#allocation2 + $0x152] sm:$0xff] }
 0x139   : > { %1286 = vrot.lane.b32.xlu1 %v3069_v26, %s2443_s26  ;;  %1146 = vst.msk [vmem:[#allocation3 + $0x10] sm:$0xff] %vm1143_vm5, %v1052_v37  ;;  %v1572_v29 = vld [vmem:[#allocation2 + $0x99] sm:$0xff] }
 0x13a   : > { %2370 = vmatpush3.bf16.xpose.msk.msra.mxu0 %vm3109_vm11, %v2368_v36  ;;  %1478 = vrot.lane.b32.xlu0 %v2754_v15, %s2444_s27  ;;  %v3237_v37 = vld [vmem:[#allocation2 + $0x15a] sm:$0xff] }
 0x13b   : > { %v1086_v45 = vpop.permute.xlu1 %1085 }
 0x13c   : > { %1163 = vst.msk [vmem:[#allocation3 + $0x98] sm:$0xff] %vm1143_vm5, %v1086_v45  ;;  %v1277_v50 = vpop.permute.xlu0 %1276 }
 0x13d   : > { %1254 = vrot.lane.b32.xlu1 %v2837_v1, %s2443_s26  ;;  %1355 = vst.msk [vmem:[#allocation3 + $0x90] sm:$0xff] %vm1336_vm6, %v1277_v50  ;;  %v1569_v1 = vld [vmem:[#allocation2 + $0x79] sm:$0xff] }
 0x13e   : > { %1446 = vrot.lane.b32.xlu0 %v2698_v61, %s2444_s27 }
 0x13f   : > { %v1054_v4 = vpop.permute.xlu1 %1053 }
 0x140   : > { %1147 = vst.msk [vmem:[#allocation3 + $0x18] sm:$0xff] %vm1143_vm5, %v1054_v4  ;;  %v1245_v46 = vpop.permute.xlu0 %1244  ;;  %v1765_v4 = vld [vmem:[#allocation2 + $0x9a] sm:$0xff] }
 0x141   : > { %1480 = vrot.lane.b32.xlu1 %v2756_v16, %s2444_s27  ;;  %1339 = vst.msk [vmem:[#allocation3 + $0x10] sm:$0xff] %vm1336_vm6, %v1245_v46 }
 0x142   : > { %1671 = vrot.lane.b32.xlu0 %v2782_v22, %s2445_s28 }
 0x143   : > { %v1279_v7 = vpop.permute.xlu1 %1278 }
 0x144   : > { %1356 = vst.msk [vmem:[#allocation3 + $0x98] sm:$0xff] %vm1336_vm6, %v1279_v7  ;;  %v1471_v34 = vpop.permute.xlu0 %1470 }
 0x145   : > { %1448 = vrot.lane.b32.xlu1 %v2700_v62, %s2444_s27  ;;  %1549 = vst.msk [vmem:[#allocation3 + $0x90] sm:$0xff] %vm1530_vm7, %v1471_v34  ;;  %v800_v34 = vld [vmem:[#allocation2 + $0x90] sm:$0xff] }
 0x146   : > { %1639 = vrot.lane.b32.xlu0 %v1569_v1, %s2445_s28 }
 0x147   : > { %v1247_v55 = vpop.permute.xlu1 %1246 }
 0x148   : > { %1340 = vst.msk [vmem:[#allocation3 + $0x18] sm:$0xff] %vm1336_vm6, %v1247_v55  ;;  %v1439_v22 = vpop.permute.xlu0 %1438 }
 0x149   : > { %1673 = vrot.lane.b32.xlu1 %v2800_v33, %s2445_s28  ;;  %1533 = vst.msk [vmem:[#allocation3 + $0x10] sm:$0xff] %vm1530_vm7, %v1439_v22 }
 0x14a   : > { %1864 = vrot.lane.b32.xlu0 %v3148_v8, %s2446_s29 }
 0x14b   : > { %v1473_v56 = vpop.permute.xlu1 %1472 }
 0x14c   : > { %1550 = vst.msk [vmem:[#allocation3 + $0x98] sm:$0xff] %vm1530_vm7, %v1473_v56  ;;  %v1664_v30 = vpop.permute.xlu0 %1663 }
 0x14d   : > { %1641 = vrot.lane.b32.xlu1 %v1570_v14, %s2445_s28  ;;  %1742 = vst.msk [vmem:[#allocation3 + $0x90] sm:$0xff] %vm1723_vm8, %v1664_v30 }
 0x14e   : > { %1832 = vrot.lane.b32.xlu0 %v2833_v54, %s2446_s29 }
 0x14f   : > { %v1441_v33 = vpop.permute.xlu1 %1440 }
 0x150   : > { %1534 = vst.msk [vmem:[#allocation3 + $0x18] sm:$0xff] %vm1530_vm7, %v1441_v33  ;;  %v1632_v48 = vpop.permute.xlu0 %1631 }
 0x151   : > { %1866 = vrot.lane.b32.xlu1 %v3157_v21, %s2446_s29  ;;  %1726 = vst.msk [vmem:[#allocation3 + $0x10] sm:$0xff] %vm1723_vm8, %v1632_v48 }
 0x152   : > { %709 = vrot.lane.b32.xlu0 %v3059_v58, %s2440_s23 }
 0x153   : > { %v1666_v39 = vpop.permute.xlu1 %1665 }
 0x154   : > { %1743 = vst.msk [vmem:[#allocation3 + $0x98] sm:$0xff] %vm1723_vm8, %v1666_v39  ;;  %v1857_v54 = vpop.permute.xlu0 %1856 }
 0x155   : > { %1834 = vrot.lane.b32.xlu1 %v2843_v3, %s2446_s29  ;;  %1935 = vst.msk [vmem:[#allocation3 + $0x90] sm:$0xff] %vm1916_vm9, %v1857_v54 }
 0x156   : > { %902 = vrot.lane.b32.xlu0 %v2754_v15, %s2441_s24 }
 0x157   : > { %v1634_v49 = vpop.permute.xlu1 %1633 }
 0x158   : > { %1727 = vst.msk [vmem:[#allocation3 + $0x18] sm:$0xff] %vm1723_vm8, %v1634_v49  ;;  %v1825_v51 = vpop.permute.xlu0 %1824 }
 0x159   : > { %711 = vrot.lane.b32.xlu1 %v3069_v26, %s2440_s23  ;;  %1919 = vst.msk [vmem:[#allocation3 + $0x10] sm:$0xff] %vm1916_vm9, %v1825_v51 }
 0x15a   : > { %870 = vrot.lane.b32.xlu0 %v2698_v61, %s2441_s24  ;;  %v1008_v61 = vld [vmem:[#allocation2 + $0x141] sm:$0xff] }
 0x15b   : > { %v1859_v3 = vpop.permute.xlu1 %1858 }
 0x15c   : > { %1936 = vst.msk [vmem:[#allocation3 + $0x98] sm:$0xff] %vm1916_vm9, %v1859_v3  ;;  %v702_v58 = vpop.permute.xlu0 %701  ;;  %v1968_v10 = vld [vmem:[#allocation3 + $0x90] sm:$0xff] }
 0x15d   : > { %904 = vrot.lane.b32.xlu1 %v2756_v16, %s2441_s24  ;;  %778 = vst.msk [vmem:[#allocation3 + $0xa0] sm:$0xff] %vm757_vm3, %v702_v58  ;;  %v1380_v58 = vld [vmem:[#allocation2 + $0xa8] sm:$0xff] }
 0x15e   : > { %1095 = vrot.lane.b32.xlu0 %v1007_v52, %s2442_s25 }
 0x15f   : > { %v1827_v15 = vpop.permute.xlu1 %1826 }
 0x160   : > { %1920 = vst.msk [vmem:[#allocation3 + $0x18] sm:$0xff] %vm1916_vm9, %v1827_v15  ;;  %v895_v53 = vpop.permute.xlu0 %894  ;;  %v1952_v17 = vld [vmem:[#allocation3 + $0x10] sm:$0xff] }
 0x161   : > { %872 = vrot.lane.b32.xlu1 %v2700_v62, %s2441_s24  ;;  %971 = vst.msk [vmem:[#allocation3 + $0xa0] sm:$0xff] %vm950_vm4, %v895_v53  ;;  %v1589_v53 = vld [vmem:[#allocation2 + $0x169] sm:$0xff] }
 0x162   : > { %1063 = vrot.lane.b32.xlu0 %v1569_v1, %s2442_s25 }
 0x163   : > { %v704_v32 = vpop.permute.xlu1 %703  ;;  %v1969_v26 = vld [vmem:[#allocation3 + $0x98] sm:$0xff] }
 0x164   : > { %779 = vst.msk [vmem:[#allocation3 + $0xa8] sm:$0xff] %vm757_vm3, %v704_v32  ;;  %v2371_v16 = vpack.c.bf16 %v1969_v26, %v1968_v10  ;;  %v863_v25 = vpop.permute.xlu0 %862  ;;  %v1381_v32 = vld [vmem:[#allocation2 + $0xb0] sm:$0xff] }
 0x165   : > { %1097 = vrot.lane.b32.xlu1 %v1008_v61, %s2442_s25  ;;  %955 = vst.msk [vmem:[#allocation3 + $0x20] sm:$0xff] %vm950_vm4, %v863_v25  ;;  %v1573_v26 = vld [vmem:[#allocation2 + $0xa9] sm:$0xff] }
 0x166   : > { %2373 = vmatprep.subr.msk.bf16.mxu0 %vm3109_vm11, %v2371_v16  ;;  %1288 = vrot.lane.b32.xlu0 %v3148_v8, %s2443_s26 }
 0x167   : > { %v897_v62 = vpop.permute.xlu1 %896  ;;  %v1953_v31 = vld [vmem:[#allocation3 + $0x18] sm:$0xff] }
 0x168   : > { %972 = vst.msk [vmem:[#allocation3 + $0xa8] sm:$0xff] %vm950_vm4, %v897_v62  ;;  %v2374_v41 = vpack.c.bf16 %v1953_v31, %v1952_v17  ;;  %v1088_v6 = vpop.permute.xlu0 %1087  ;;  %v1590_v17 = vld [vmem:[#allocation2 + $0x171] sm:$0xff] }
 0x169   : > { %1065 = vrot.lane.b32.xlu1 %v1570_v14, %s2442_s25  ;;  %1164 = vst.msk [vmem:[#allocation3 + $0xa0] sm:$0xff] %vm1143_vm5, %v1088_v6  ;;  %v801_v14 = vld [vmem:[#allocation2 + $0x98] sm:$0xff]  ;;  %v3299_v62 = vld [vmem:[#allocation2 + $0x16a] sm:$0xff] }
 0x16a   : > { %2376 = vmatpush3.bf16.xpose.msk.msra.mxu0 %vm3109_vm11, %v2374_v41  ;;  %1256 = vrot.lane.b32.xlu0 %v1184_v42, %s2443_s26  ;;  %v1574_v41 = vld [vmem:[#allocation2 + $0xb1] sm:$0xff] }
 0x16b   : > { %v865_v27 = vpop.permute.xlu1 %864  ;;  %v1766_v6 = vld [vmem:[#allocation2 + $0xaa] sm:$0xff] }
 0x16c   : > { %956 = vst.msk [vmem:[#allocation3 + $0x28] sm:$0xff] %vm950_vm4, %v865_v27  ;;  %v1056_v47 = vpop.permute.xlu0 %1055 }
 0x16d   : > { %1290 = vrot.lane.b32.xlu1 %v3157_v21, %s2443_s26  ;;  %1148 = vst.msk [vmem:[#allocation3 + $0x20] sm:$0xff] %vm1143_vm5, %v1056_v47  ;;  %v3307_v47 = vld [vmem:[#allocation2 + $0x172] sm:$0xff] }
 0x16e   : > { %1482 = vrot.lane.b32.xlu0 %v2770_v19, %s2444_s27 }
 0x16f   : > { %v1090_v13 = vpop.permute.xlu1 %1089 }
 0x170   : > { %1165 = vst.msk [vmem:[#allocation3 + $0xa8] sm:$0xff] %vm1143_vm5, %v1090_v13  ;;  %v1281_v38 = vpop.permute.xlu0 %1280 }
 0x171   : > { %1258 = vrot.lane.b32.xlu1 %v1185_v11, %s2443_s26  ;;  %1357 = vst.msk [vmem:[#allocation3 + $0xa0] sm:$0xff] %vm1336_vm6, %v1281_v38  ;;  %v1767_v38 = vld [vmem:[#allocation2 + $0xb2] sm:$0xff] }
 0x172   : > { %1450 = vrot.lane.b32.xlu0 %v2702_v63, %s2444_s27  ;;  %v1588_v63 = vld [vmem:[#allocation2 + $0x159] sm:$0xff] }
 0x173   : > { %v1058_v59 = vpop.permute.xlu1 %1057 }
 0x174   : > { %1149 = vst.msk [vmem:[#allocation3 + $0x28] sm:$0xff] %vm1143_vm5, %v1058_v59  ;;  %v1249_v18 = vpop.permute.xlu0 %1248 }
 0x175   : > { %1484 = vrot.lane.b32.xlu1 %v2772_v20, %s2444_s27  ;;  %1341 = vst.msk [vmem:[#allocation3 + $0x20] sm:$0xff] %vm1336_vm6, %v1249_v18 }
 0x176   : > { %1675 = vrot.lane.b32.xlu0 %v1587_v12, %s2445_s28 }
 0x177   : > { %v1283_v40 = vpop.permute.xlu1 %1282 }
 0x178   : > { %1358 = vst.msk [vmem:[#allocation3 + $0xa8] sm:$0xff] %vm1336_vm6, %v1283_v40  ;;  %v1475_v2 = vpop.permute.xlu0 %1474 }
 0x179   : > { %1452 = vrot.lane.b32.xlu1 %v2713_v0, %s2444_s27  ;;  %1551 = vst.msk [vmem:[#allocation3 + $0xa0] sm:$0xff] %vm1530_vm7, %v1475_v2  ;;  %v1764_v0 = vld [vmem:[#allocation2 + $0x92] sm:$0xff] }
 0x17a   : > { %1643 = vrot.lane.b32.xlu0 %v1571_v43, %s2445_s28 }
 0x17b   : > { %v1251_v5 = vpop.permute.xlu1 %1250 }
 0x17c   : > { %1342 = vst.msk [vmem:[#allocation3 + $0x28] sm:$0xff] %vm1336_vm6, %v1251_v5  ;;  %v1443_v9 = vpop.permute.xlu0 %1442 }
 0x17d   : > { %1677 = vrot.lane.b32.xlu1 %v1588_v63, %s2445_s28  ;;  %1535 = vst.msk [vmem:[#allocation3 + $0x20] sm:$0xff] %vm1530_vm7, %v1443_v9 }
 0x17e   : > { %1868 = vrot.lane.b32.xlu0 %v3229_v28, %s2446_s29 }
 0x17f   : > { %v1477_v35 = vpop.permute.xlu1 %1476 }
 0x180   : > { %1552 = vst.msk [vmem:[#allocation3 + $0xa8] sm:$0xff] %vm1530_vm7, %v1477_v35  ;;  %v1668_v36 = vpop.permute.xlu0 %1667 }
 0x181   : > { %1645 = vrot.lane.b32.xlu1 %v1572_v29, %s2445_s28  ;;  %1744 = vst.msk [vmem:[#allocation3 + $0xa0] sm:$0xff] %vm1723_vm8, %v1668_v36 }
 0x182   : > { %1836 = vrot.lane.b32.xlu0 %v1764_v0, %s2446_s29 }
 0x183   : > { %v1445_v45 = vpop.permute.xlu1 %1444 }
 0x184   : > { %1536 = vst.msk [vmem:[#allocation3 + $0x28] sm:$0xff] %vm1530_vm7, %v1445_v45  ;;  %v1636_v50 = vpop.permute.xlu0 %1635 }
 0x185   : > { %1870 = vrot.lane.b32.xlu1 %v3237_v37, %s2446_s29  ;;  %1728 = vst.msk [vmem:[#allocation3 + $0x20] sm:$0xff] %vm1723_vm8, %v1636_v50 }
 0x186   : > { %713 = vrot.lane.b32.xlu0 %v3148_v8, %s2440_s23 }
 0x187   : > { %v1670_v46 = vpop.permute.xlu1 %1669 }
 0x188   : > { %1745 = vst.msk [vmem:[#allocation3 + $0xa8] sm:$0xff] %vm1723_vm8, %v1670_v46  ;;  %v1861_v7 = vpop.permute.xlu0 %1860 }
 0x189   : > { %1838 = vrot.lane.b32.xlu1 %v1765_v4, %s2446_s29  ;;  %1937 = vst.msk [vmem:[#allocation3 + $0xa0] sm:$0xff] %vm1916_vm9, %v1861_v7  ;;  %v1398_v7 = vld [vmem:[#allocation2 + $0x180] sm:$0xff] }
 0x18a   : > { %906 = vrot.lane.b32.xlu0 %v2770_v19, %s2441_s24 }
 0x18b   : > { %v1638_v1 = vpop.permute.xlu1 %1637 }
 0x18c   : > { %1729 = vst.msk [vmem:[#allocation3 + $0x28] sm:$0xff] %vm1723_vm8, %v1638_v1  ;;  %v1829_v55 = vpop.permute.xlu0 %1828 }
 0x18d   : > { %715 = vrot.lane.b32.xlu1 %v3157_v21, %s2440_s23  ;;  %1921 = vst.msk [vmem:[#allocation3 + $0x20] sm:$0xff] %vm1916_vm9, %v1829_v55  ;;  %v1382_v55 = vld [vmem:[#allocation2 + $0xc0] sm:$0xff] }
 0x18e   : > { %874 = vrot.lane.b32.xlu0 %v800_v34, %s2441_s24 }
 0x18f   : > { %v1863_v8 = vpop.permute.xlu1 %1862 }
 0x190   : > { %1938 = vst.msk [vmem:[#allocation3 + $0xa8] sm:$0xff] %vm1916_vm9, %v1863_v8  ;;  %v706_v22 = vpop.permute.xlu0 %705  ;;  %v1970_v56 = vld [vmem:[#allocation3 + $0xa0] sm:$0xff] }
 0x191   : > { %908 = vrot.lane.b32.xlu1 %v2772_v20, %s2441_s24  ;;  %780 = vst.msk [vmem:[#allocation3 + $0xb0] sm:$0xff] %vm757_vm3, %v706_v22  ;;  %v1399_v22 = vld [vmem:[#allocation2 + $0x188] sm:$0xff] }
 0x192   : > { %1099 = vrot.lane.b32.xlu0 %v1587_v12, %s2442_s25  ;;  %v818_v12 = vld [vmem:[#allocation2 + $0x168] sm:$0xff] }
 0x193   : > { %v1831_v19 = vpop.permute.xlu1 %1830 }
 0x194   : > { %1922 = vst.msk [vmem:[#allocation3 + $0x28] sm:$0xff] %vm1916_vm9, %v1831_v19  ;;  %v899_v30 = vpop.permute.xlu0 %898  ;;  %v1954_v48 = vld [vmem:[#allocation3 + $0x20] sm:$0xff]  ;;  %v1591_v19 = vld [vmem:[#allocation2 + $0x181] sm:$0xff] }
 0x195   : > { %876 = vrot.lane.b32.xlu1 %v801_v14, %s2441_s24  ;;  %973 = vst.msk [vmem:[#allocation3 + $0xb0] sm:$0xff] %vm950_vm4, %v899_v30  ;;  %v1383_v30 = vld [vmem:[#allocation2 + $0xc8] sm:$0xff] }
 0x196   : > { %1067 = vrot.lane.b32.xlu0 %v1571_v43, %s2442_s25 }
 0x197   : > { %v708_v21 = vpop.permute.xlu1 %707  ;;  %v1971_v33 = vld [vmem:[#allocation3 + $0xa8] sm:$0xff] }
 0x198   : > { %781 = vst.msk [vmem:[#allocation3 + $0xb8] sm:$0xff] %vm757_vm3, %v708_v21  ;;  %v2377_v20 = vpack.c.bf16 %v1971_v33, %v1970_v56  ;;  %v867_v39 = vpop.permute.xlu0 %866  ;;  %v1575_v33 = vld [vmem:[#allocation2 + $0xc1] sm:$0xff] }
 0x199   : > { %1101 = vrot.lane.b32.xlu1 %v1588_v63, %s2442_s25  ;;  %957 = vst.msk [vmem:[#allocation3 + $0x30] sm:$0xff] %vm950_vm4, %v867_v39 }
 0x19a   : > { %2379 = vmatprep.subr.msk.bf16.mxu0 %vm3109_vm11, %v2377_v20  ;;  %1292 = vrot.lane.b32.xlu0 %v3229_v28, %s2443_s26 }
 0x19b   : > { %v901_v44 = vpop.permute.xlu1 %900  ;;  %v1955_v57 = vld [vmem:[#allocation3 + $0x28] sm:$0xff] }
 0x19c   : > { %974 = vst.msk [vmem:[#allocation3 + $0xb8] sm:$0xff] %vm950_vm4, %v901_v44  ;;  %v2380_v54 = vpack.c.bf16 %v1955_v57, %v1954_v48  ;;  %v1092_v49 = vpop.permute.xlu0 %1091  ;;  %v1592_v48 = vld [vmem:[#allocation2 + $0x189] sm:$0xff] }
 0x19d   : > { %1069 = vrot.lane.b32.xlu1 %v1572_v29, %s2442_s25  ;;  %1166 = vst.msk [vmem:[#allocation3 + $0xb0] sm:$0xff] %vm1143_vm5, %v1092_v49  ;;  %v1784_v44 = vld [vmem:[#allocation2 + $0x182] sm:$0xff] }
 0x19e   : > { %2382 = vmatpush3.bf16.xpose.msk.msra.mxu0 %vm3109_vm11, %v2380_v54  ;;  %1260 = vrot.lane.b32.xlu0 %v1764_v0, %s2443_s26  ;;  %v1576_v54 = vld [vmem:[#allocation2 + $0xc9] sm:$0xff] }
 0x19f   : > { %v869_v51 = vpop.permute.xlu1 %868 }
 0x1a0   : > { %958 = vst.msk [vmem:[#allocation3 + $0x38] sm:$0xff] %vm950_vm4, %v869_v51  ;;  %v1060_v3 = vpop.permute.xlu0 %1059  ;;  %v1768_v51 = vld [vmem:[#allocation2 + $0xc2] sm:$0xff] }
 0x1a1   : > { %1294 = vrot.lane.b32.xlu1 %v3237_v37, %s2443_s26  ;;  %1150 = vst.msk [vmem:[#allocation3 + $0x30] sm:$0xff] %vm1143_vm5, %v1060_v3 }
 0x1a2   : > { %1486 = vrot.lane.b32.xlu0 %v2786_v23, %s2444_s27 }
 0x1a3   : > { %v1094_v52 = vpop.permute.xlu1 %1093 }
 0x1a4   : > { %1167 = vst.msk [vmem:[#allocation3 + $0xb8] sm:$0xff] %vm1143_vm5, %v1094_v52  ;;  %v1285_v15 = vpop.permute.xlu0 %1284  ;;  %v1785_v52 = vld [vmem:[#allocation2 + $0x18a] sm:$0xff] }
 0x1a5   : > { %1262 = vrot.lane.b32.xlu1 %v1765_v4, %s2443_s26  ;;  %1359 = vst.msk [vmem:[#allocation3 + $0xb0] sm:$0xff] %vm1336_vm6, %v1285_v15 }
 0x1a6   : > { %1454 = vrot.lane.b32.xlu0 %v1380_v58, %s2444_s27 }
 0x1a7   : > { %v1062_v10 = vpop.permute.xlu1 %1061 }
 0x1a8   : > { %1151 = vst.msk [vmem:[#allocation3 + $0x38] sm:$0xff] %vm1143_vm5, %v1062_v10  ;;  %v1253_v61 = vpop.permute.xlu0 %1252  ;;  %v1769_v10 = vld [vmem:[#allocation2 + $0xca] sm:$0xff] }
 0x1a9   : > { %1488 = vrot.lane.b32.xlu1 %v2788_v24, %s2444_s27  ;;  %1343 = vst.msk [vmem:[#allocation3 + $0x30] sm:$0xff] %vm1336_vm6, %v1253_v61 }
 0x1aa   : > { %1679 = vrot.lane.b32.xlu0 %v1589_v53, %s2445_s28 }
 0x1ab   : > { %v1287_v23 = vpop.permute.xlu1 %1286 }
 0x1ac   : > { %1360 = vst.msk [vmem:[#allocation3 + $0xb8] sm:$0xff] %vm1336_vm6, %v1287_v23  ;;  %v1479_v16 = vpop.permute.xlu0 %1478 }
 0x1ad   : > { %1456 = vrot.lane.b32.xlu1 %v1381_v32, %s2444_s27  ;;  %1553 = vst.msk [vmem:[#allocation3 + $0xb0] sm:$0xff] %vm1530_vm7, %v1479_v16 }
 0x1ae   : > { %1647 = vrot.lane.b32.xlu0 %v1573_v26, %s2445_s28 }
 0x1af   : > { %v1255_v25 = vpop.permute.xlu1 %1254 }
 0x1b0   : > { %1344 = vst.msk [vmem:[#allocation3 + $0x38] sm:$0xff] %vm1336_vm6, %v1255_v25  ;;  %v1447_v31 = vpop.permute.xlu0 %1446 }
 0x1b1   : > { %1681 = vrot.lane.b32.xlu1 %v1590_v17, %s2445_s28  ;;  %1537 = vst.msk [vmem:[#allocation3 + $0x30] sm:$0xff] %vm1530_vm7, %v1447_v31 }
 0x1b2   : > { %1872 = vrot.lane.b32.xlu0 %v3299_v62, %s2446_s29 }
 0x1b3   : > { %v1481_v42 = vpop.permute.xlu1 %1480 }
 0x1b4   : > { %1554 = vst.msk [vmem:[#allocation3 + $0xb8] sm:$0xff] %vm1530_vm7, %v1481_v42  ;;  %v1672_v27 = vpop.permute.xlu0 %1671 }
 0x1b5   : > { %1649 = vrot.lane.b32.xlu1 %v1574_v41, %s2445_s28  ;;  %1746 = vst.msk [vmem:[#allocation3 + $0xb0] sm:$0xff] %vm1723_vm8, %v1672_v27 }
 0x1b6   : > { %1840 = vrot.lane.b32.xlu0 %v1766_v6, %s2446_s29 }
 0x1b7   : > { %v1449_v11 = vpop.permute.xlu1 %1448 }
 0x1b8   : > { %1538 = vst.msk [vmem:[#allocation3 + $0x38] sm:$0xff] %vm1530_vm7, %v1449_v11  ;;  %v1640_v13 = vpop.permute.xlu0 %1639 }
 0x1b9   : > { %1874 = vrot.lane.b32.xlu1 %v3307_v47, %s2446_s29  ;;  %1730 = vst.msk [vmem:[#allocation3 + $0x30] sm:$0xff] %vm1723_vm8, %v1640_v13 }
 0x1ba   : > { %717 = vrot.lane.b32.xlu0 %v3229_v28, %s2440_s23 }
 0x1bb   : > { %v1674_v59 = vpop.permute.xlu1 %1673 }
 0x1bc   : > { %1747 = vst.msk [vmem:[#allocation3 + $0xb8] sm:$0xff] %vm1723_vm8, %v1674_v59  ;;  %v1865_v18 = vpop.permute.xlu0 %1864 }
 0x1bd   : > { %1842 = vrot.lane.b32.xlu1 %v1767_v38, %s2446_s29  ;;  %1939 = vst.msk [vmem:[#allocation3 + $0xb0] sm:$0xff] %vm1916_vm9, %v1865_v18 }
 0x1be   : > { %910 = vrot.lane.b32.xlu0 %v818_v12, %s2441_s24  ;;  %v1400_v12 = vld [vmem:[#allocation2 + $0x198] sm:$0xff] }
 0x1bf   : > { %v1642_v40 = vpop.permute.xlu1 %1641 }
 0x1c0   : > { %1731 = vst.msk [vmem:[#allocation3 + $0x38] sm:$0xff] %vm1723_vm8, %v1642_v40  ;;  %v1833_v43 = vpop.permute.xlu0 %1832 }
 0x1c1   : > { %719 = vrot.lane.b32.xlu1 %v3237_v37, %s2440_s23  ;;  %1923 = vst.msk [vmem:[#allocation3 + $0x30] sm:$0xff] %vm1916_vm9, %v1833_v43  ;;  %v1384_v43 = vld [vmem:[#allocation2 + $0xd8] sm:$0xff] }
 0x1c2   : > { %878 = vrot.lane.b32.xlu0 %v1380_v58, %s2441_s24 }
 0x1c3   : > { %v1867_v2 = vpop.permute.xlu1 %1866 }
 0x1c4   : > { %1940 = vst.msk [vmem:[#allocation3 + $0xb8] sm:$0xff] %vm1916_vm9, %v1867_v2  ;;  %v710_v63 = vpop.permute.xlu0 %709  ;;  %v1972_v28 = vld [vmem:[#allocation3 + $0xb0] sm:$0xff] }
 0x1c5   : > { %912 = vrot.lane.b32.xlu1 %v2788_v24, %s2441_s24  ;;  %782 = vst.msk [vmem:[#allocation3 + $0xc0] sm:$0xff] %vm757_vm3, %v710_v63  ;;  %v1401_v63 = vld [vmem:[#allocation2 + $0x1a0] sm:$0xff] }
 0x1c6   : > { %1103 = vrot.lane.b32.xlu0 %v1589_v53, %s2442_s25 }
 0x1c7   : > { %v1835_v5 = vpop.permute.xlu1 %1834 }
 0x1c8   : > { %1924 = vst.msk [vmem:[#allocation3 + $0x38] sm:$0xff] %vm1916_vm9, %v1835_v5  ;;  %v903_v9 = vpop.permute.xlu0 %902  ;;  %v1956_v0 = vld [vmem:[#allocation3 + $0x30] sm:$0xff] }
 0x1c9   : > { %880 = vrot.lane.b32.xlu1 %v1381_v32, %s2441_s24  ;;  %975 = vst.msk [vmem:[#allocation3 + $0xc0] sm:$0xff] %vm950_vm4, %v903_v9 }
 0x1ca   : > { %1071 = vrot.lane.b32.xlu0 %v1573_v26, %s2442_s25 }
 0x1cb   : > { %v712_v29 = vpop.permute.xlu1 %711  ;;  %v1973_v35 = vld [vmem:[#allocation3 + $0xb8] sm:$0xff] }
 0x1cc   : > { %783 = vst.msk [vmem:[#allocation3 + $0xc8] sm:$0xff] %vm757_vm3, %v712_v29  ;;  %v2383_v24 = vpack.c.bf16 %v1973_v35, %v1972_v28  ;;  %v871_v36 = vpop.permute.xlu0 %870  ;;  %v1593_v28 = vld [vmem:[#allocation2 + $0x199] sm:$0xff] }
 0x1cd   : > { %1105 = vrot.lane.b32.xlu1 %v1590_v17, %s2442_s25  ;;  %959 = vst.msk [vmem:[#allocation3 + $0x40] sm:$0xff] %vm950_vm4, %v871_v36  ;;  %v1385_v29 = vld [vmem:[#allocation2 + $0xe0] sm:$0xff] }
 0x1ce   : > { %2385 = vmatprep.subr.msk.bf16.mxu0 %vm3109_vm11, %v2383_v24  ;;  %1296 = vrot.lane.b32.xlu0 %v3299_v62, %s2443_s26  ;;  %v1577_v24 = vld [vmem:[#allocation2 + $0xd9] sm:$0xff]  ;;  %v1594_v36 = vld [vmem:[#allocation2 + $0x1a1] sm:$0xff] }
 0x1cf   : > { %v905_v37 = vpop.permute.xlu1 %904  ;;  %v1957_v45 = vld [vmem:[#allocation3 + $0x38] sm:$0xff] }
 0x1d0   : > { %976 = vst.msk [vmem:[#allocation3 + $0xc8] sm:$0xff] %vm950_vm4, %v905_v37  ;;  %v2386_v50 = vpack.c.bf16 %v1957_v45, %v1956_v0  ;;  %v1096_v4 = vpop.permute.xlu0 %1095  ;;  %v1786_v45 = vld [vmem:[#allocation2 + $0x19a] sm:$0xff] }
 0x1d1   : > { %1073 = vrot.lane.b32.xlu1 %v1574_v41, %s2442_s25  ;;  %1168 = vst.msk [vmem:[#allocation3 + $0xc0] sm:$0xff] %vm1143_vm5, %v1096_v4  ;;  %v1578_v4 = vld [vmem:[#allocation2 + $0xe1] sm:$0xff] }
 0x1d2   : > { %2388 = vmatpush3.bf16.xpose.msk.msra.mxu0 %vm3109_vm11, %v2386_v50  ;;  %1264 = vrot.lane.b32.xlu0 %v1766_v6, %s2443_s26 }
 0x1d3   : > { %v873_v46 = vpop.permute.xlu1 %872 }
 0x1d4   : > { %960 = vst.msk [vmem:[#allocation3 + $0x48] sm:$0xff] %vm950_vm4, %v873_v46  ;;  %v1064_v1 = vpop.permute.xlu0 %1063 }
 0x1d5   : > { %1298 = vrot.lane.b32.xlu1 %v3307_v47, %s2443_s26  ;;  %1152 = vst.msk [vmem:[#allocation3 + $0x40] sm:$0xff] %vm1143_vm5, %v1064_v1 }
 0x1d6   : > { %1490 = vrot.lane.b32.xlu0 %v1398_v7, %s2444_s27 }
 0x1d7   : > { %v1098_v34 = vpop.permute.xlu1 %1097 }
 0x1d8   : > { %1169 = vst.msk [vmem:[#allocation3 + $0xc8] sm:$0xff] %vm1143_vm5, %v1098_v34  ;;  %v1289_v8 = vpop.permute.xlu0 %1288  ;;  %v1787_v34 = vld [vmem:[#allocation2 + $0x1a2] sm:$0xff] }
 0x1d9   : > { %1266 = vrot.lane.b32.xlu1 %v1767_v38, %s2443_s26  ;;  %1361 = vst.msk [vmem:[#allocation3 + $0xc0] sm:$0xff] %vm1336_vm6, %v1289_v8 }
 0x1da   : > { %1458 = vrot.lane.b32.xlu0 %v1382_v55, %s2444_s27 }
 0x1db   : > { %v1066_v14 = vpop.permute.xlu1 %1065 }
 0x1dc   : > { %1153 = vst.msk [vmem:[#allocation3 + $0x48] sm:$0xff] %vm1143_vm5, %v1066_v14  ;;  %v1257_v56 = vpop.permute.xlu0 %1256  ;;  %v3437_v14 = vld [vmem:[%s3529_s1] sm:$0xff] }
 0x1dd   : > { %1492 = vrot.lane.b32.xlu1 %v1399_v22, %s2444_s27  ;;  %1345 = vst.msk [vmem:[#allocation3 + $0x40] sm:$0xff] %vm1336_vm6, %v1257_v56  ;;  %2363 = vmatprep.mubr.msk.f32.mxu0 %vm1982_vm10, %v3437_v14 }
 0x1de   : > { %1683 = vrot.lane.b32.xlu0 %v1591_v19, %s2445_s28 }
 0x1df   : > { %v1291_v21 = vpop.permute.xlu1 %1290 }
 0x1e0   : > { %1362 = vst.msk [vmem:[#allocation3 + $0xc8] sm:$0xff] %vm1336_vm6, %v1291_v21  ;;  %v1483_v20 = vpop.permute.xlu0 %1482 }
 0x1e1   : > { %1460 = vrot.lane.b32.xlu1 %v1383_v30, %s2444_s27  ;;  %1555 = vst.msk [vmem:[#allocation3 + $0xc0] sm:$0xff] %vm1530_vm7, %v1483_v20 }
 0x1e2   : > { %1651 = vrot.lane.b32.xlu0 %v1575_v33, %s2445_s28 }
 0x1e3   : > { %v1259_v39 = vpop.permute.xlu1 %1258 }
 0x1e4   : > { %1346 = vst.msk [vmem:[#allocation3 + $0x48] sm:$0xff] %vm1336_vm6, %v1259_v39  ;;  %v1451_v57 = vpop.permute.xlu0 %1450 }
 0x1e5   : > { %1685 = vrot.lane.b32.xlu1 %v1592_v48, %s2445_s28  ;;  %1539 = vst.msk [vmem:[#allocation3 + $0x40] sm:$0xff] %vm1530_vm7, %v1451_v57 }
 0x1e6   : > { %1876 = vrot.lane.b32.xlu0 %v1784_v44, %s2446_s29 }
 0x1e7   : > { %v1485_v49 = vpop.permute.xlu1 %1484 }
 0x1e8   : > { %1556 = vst.msk [vmem:[#allocation3 + $0xc8] sm:$0xff] %vm1530_vm7, %v1485_v49  ;;  %v1676_v3 = vpop.permute.xlu0 %1675 }
 0x1e9   : > { %1653 = vrot.lane.b32.xlu1 %v1576_v54, %s2445_s28  ;;  %1748 = vst.msk [vmem:[#allocation3 + $0xc0] sm:$0xff] %vm1723_vm8, %v1676_v3 }
 0x1ea   : > { %1844 = vrot.lane.b32.xlu0 %v1768_v51, %s2446_s29 }
 0x1eb   : > { %v1453_v58 = vpop.permute.xlu1 %1452 }
 0x1ec   : > { %1540 = vst.msk [vmem:[#allocation3 + $0x48] sm:$0xff] %vm1530_vm7, %v1453_v58  ;;  %v1644_v15 = vpop.permute.xlu0 %1643 }
 0x1ed   : > { %1878 = vrot.lane.b32.xlu1 %v1785_v52, %s2446_s29  ;;  %1732 = vst.msk [vmem:[#allocation3 + $0x40] sm:$0xff] %vm1723_vm8, %v1644_v15 }
 0x1ee   : > { %721 = vrot.lane.b32.xlu0 %v3299_v62, %s2440_s23 }
 0x1ef   : > { %v1678_v53 = vpop.permute.xlu1 %1677 }
 0x1f0   : > { %1749 = vst.msk [vmem:[#allocation3 + $0xc8] sm:$0xff] %vm1723_vm8, %v1678_v53  ;;  %v1869_v61 = vpop.permute.xlu0 %1868 }
 0x1f1   : > { %1846 = vrot.lane.b32.xlu1 %v1769_v10, %s2446_s29  ;;  %1941 = vst.msk [vmem:[#allocation3 + $0xc0] sm:$0xff] %vm1916_vm9, %v1869_v61 }
 0x1f2   : > { %914 = vrot.lane.b32.xlu0 %v1398_v7, %s2441_s24  ;;  %v1770_v7 = vld [vmem:[#allocation2 + $0xda] sm:$0xff] }
 0x1f3   : > { %v1646_v32 = vpop.permute.xlu1 %1645 }
 0x1f4   : > { %1733 = vst.msk [vmem:[#allocation3 + $0x48] sm:$0xff] %vm1723_vm8, %v1646_v32  ;;  %v1837_v23 = vpop.permute.xlu0 %1836 }
 0x1f5   : > { %723 = vrot.lane.b32.xlu1 %v3307_v47, %s2440_s23  ;;  %1925 = vst.msk [vmem:[#allocation3 + $0x40] sm:$0xff] %vm1916_vm9, %v1837_v23 }
 0x1f6   : > { %882 = vrot.lane.b32.xlu0 %v1382_v55, %s2441_s24 }
 0x1f7   : > { %v1871_v26 = vpop.permute.xlu1 %1870 }
 0x1f8   : > { %1942 = vst.msk [vmem:[#allocation3 + $0xc8] sm:$0xff] %vm1916_vm9, %v1871_v26  ;;  %v714_v16 = vpop.permute.xlu0 %713  ;;  %v1974_v25 = vld [vmem:[#allocation3 + $0xc0] sm:$0xff] }
 0x1f9   : > { %916 = vrot.lane.b32.xlu1 %v1399_v22, %s2441_s24  ;;  %784 = vst.msk [vmem:[#allocation3 + $0xd0] sm:$0xff] %vm757_vm3, %v714_v16  ;;  %v1771_v22 = vld [vmem:[#allocation2 + $0xe2] sm:$0xff] }
 0x1fa   : > { %1107 = vrot.lane.b32.xlu0 %v1591_v19, %s2442_s25 }
 0x1fb   : > { %v1839_v17 = vpop.permute.xlu1 %1838 }
 0x1fc   : > { %1926 = vst.msk [vmem:[#allocation3 + $0x48] sm:$0xff] %vm1916_vm9, %v1839_v17  ;;  %v907_v62 = vpop.permute.xlu0 %906  ;;  %v1958_v6 = vld [vmem:[#allocation3 + $0x40] sm:$0xff] }
 0x1fd   : > { %884 = vrot.lane.b32.xlu1 %v1383_v30, %s2441_s24  ;;  %977 = vst.msk [vmem:[#allocation3 + $0xd0] sm:$0xff] %vm950_vm4, %v907_v62 }
 0x1fe   : > { %1075 = vrot.lane.b32.xlu0 %v1575_v33, %s2442_s25 }
 0x1ff   : > { %v716_v31 = vpop.permute.xlu1 %715  ;;  %v1975_v41 = vld [vmem:[#allocation3 + $0xc8] sm:$0xff] }
 0x200   : > { %785 = vst.msk [vmem:[#allocation3 + $0xd8] sm:$0xff] %vm757_vm3, %v716_v31  ;;  %v2389_v42 = vpack.c.bf16 %v1975_v41, %v1974_v25  ;;  %v875_v27 = vpop.permute.xlu0 %874 }
 0x201   : > { %1109 = vrot.lane.b32.xlu1 %v1592_v48, %s2442_s25  ;;  %961 = vst.msk [vmem:[#allocation3 + $0x50] sm:$0xff] %vm950_vm4, %v875_v27 }
 0x202   : > { %2391 = vmatprep.subr.msk.bf16.mxu0 %vm3109_vm11, %v2389_v42  ;;  %1300 = vrot.lane.b32.xlu0 %v1784_v44, %s2443_s26 }
 0x203   : > { %v909_v47 = vpop.permute.xlu1 %908  ;;  %v1959_v11 = vld [vmem:[#allocation3 + $0x48] sm:$0xff] }
 0x204   : > { %978 = vst.msk [vmem:[#allocation3 + $0xd8] sm:$0xff] %vm950_vm4, %v909_v47  ;;  %v2392_v13 = vpack.c.bf16 %v1959_v11, %v1958_v6  ;;  %v1100_v38 = vpop.permute.xlu0 %1099 }
 0x205   : > { %1077 = vrot.lane.b32.xlu1 %v1576_v54, %s2442_s25  ;;  %1170 = vst.msk [vmem:[#allocation3 + $0xd0] sm:$0xff] %vm1143_vm5, %v1100_v38 }
 0x206   : > { %2394 = vmatpush3.bf16.xpose.msk.msra.mxu0 %vm3109_vm11, %v2392_v13  ;;  %1268 = vrot.lane.b32.xlu0 %v1768_v51, %s2443_s26 }
 0x207   : > { %v877_v59 = vpop.permute.xlu1 %876 }
 0x208   : > { %962 = vst.msk [vmem:[#allocation3 + $0x58] sm:$0xff] %vm950_vm4, %v877_v59  ;;  %v1068_v18 = vpop.permute.xlu0 %1067 }
 0x209   : > { %1302 = vrot.lane.b32.xlu1 %v1785_v52, %s2443_s26  ;;  %1154 = vst.msk [vmem:[#allocation3 + $0x50] sm:$0xff] %vm1143_vm5, %v1068_v18 }
 0x20a   : > { %1494 = vrot.lane.b32.xlu0 %v1400_v12, %s2444_s27 }
 0x20b   : > { %v1102_v40 = vpop.permute.xlu1 %1101 }
 0x20c   : > { %1171 = vst.msk [vmem:[#allocation3 + $0xd8] sm:$0xff] %vm1143_vm5, %v1102_v40  ;;  %v1293_v2 = vpop.permute.xlu0 %1292 }
 0x20d   : > { %1270 = vrot.lane.b32.xlu1 %v1769_v10, %s2443_s26  ;;  %1363 = vst.msk [vmem:[#allocation3 + $0xd0] sm:$0xff] %vm1336_vm6, %v1293_v2 }
 0x20e   : > { %1462 = vrot.lane.b32.xlu0 %v1384_v43, %s2444_s27 }
 0x20f   : > { %v1070_v5 = vpop.permute.xlu1 %1069 }
 0x210   : > { %1155 = vst.msk [vmem:[#allocation3 + $0x58] sm:$0xff] %vm1143_vm5, %v1070_v5  ;;  %v1261_v9 = vpop.permute.xlu0 %1260 }
 0x211   : > { %1496 = vrot.lane.b32.xlu1 %v1401_v63, %s2444_s27  ;;  %1347 = vst.msk [vmem:[#allocation3 + $0x50] sm:$0xff] %vm1336_vm6, %v1261_v9 }
 0x212   : > { %1687 = vrot.lane.b32.xlu0 %v1593_v28, %s2445_s28 }
 0x213   : > { %v1295_v35 = vpop.permute.xlu1 %1294 }
 0x214   : > { %1364 = vst.msk [vmem:[#allocation3 + $0xd8] sm:$0xff] %vm1336_vm6, %v1295_v35  ;;  %v1487_v0 = vpop.permute.xlu0 %1486 }
 0x215   : > { %1464 = vrot.lane.b32.xlu1 %v1385_v29, %s2444_s27  ;;  %1557 = vst.msk [vmem:[#allocation3 + $0xd0] sm:$0xff] %vm1530_vm7, %v1487_v0 }
 0x216   : > { %1655 = vrot.lane.b32.xlu0 %v1577_v24, %s2445_s28 }
 0x217   : > { %v1263_v37 = vpop.permute.xlu1 %1262 }
 0x218   : > { %1348 = vst.msk [vmem:[#allocation3 + $0x58] sm:$0xff] %vm1336_vm6, %v1263_v37  ;;  %v1455_v50 = vpop.permute.xlu0 %1454 }
 0x219   : > { %1689 = vrot.lane.b32.xlu1 %v1594_v36, %s2445_s28  ;;  %1541 = vst.msk [vmem:[#allocation3 + $0x50] sm:$0xff] %vm1530_vm7, %v1455_v50 }
 0x21a   : > { %1880 = vrot.lane.b32.xlu0 %v1786_v45, %s2446_s29 }
 0x21b   : > { %v1489_v46 = vpop.permute.xlu1 %1488 }
 0x21c   : > { %1558 = vst.msk [vmem:[#allocation3 + $0xd8] sm:$0xff] %vm1530_vm7, %v1489_v46  ;;  %v1680_v1 = vpop.permute.xlu0 %1679 }
 0x21d   : > { %1657 = vrot.lane.b32.xlu1 %v1578_v4, %s2445_s28  ;;  %1750 = vst.msk [vmem:[#allocation3 + $0xd0] sm:$0xff] %vm1723_vm8, %v1680_v1 }
 0x21e   : > { %1848 = vrot.lane.b32.xlu0 %v1770_v7, %s2446_s29 }
 0x21f   : > { %v1457_v55 = vpop.permute.xlu1 %1456 }
 0x220   : > { %1542 = vst.msk [vmem:[#allocation3 + $0x58] sm:$0xff] %vm1530_vm7, %v1457_v55  ;;  %v1648_v8 = vpop.permute.xlu0 %1647 }
 0x221   : > { %1882 = vrot.lane.b32.xlu1 %v1787_v34, %s2446_s29  ;;  %1734 = vst.msk [vmem:[#allocation3 + $0x50] sm:$0xff] %vm1723_vm8, %v1648_v8 }
 0x223   : > { %v1682_v19 = vpop.permute.xlu1 %1681 }
 0x224   : > { %1751 = vst.msk [vmem:[#allocation3 + $0xd8] sm:$0xff] %vm1723_vm8, %v1682_v19  ;;  %v1873_v56 = vpop.permute.xlu0 %1872 }
 0x225   : > { %1850 = vrot.lane.b32.xlu1 %v1771_v22, %s2446_s29  ;;  %1943 = vst.msk [vmem:[#allocation3 + $0xd0] sm:$0xff] %vm1916_vm9, %v1873_v56 }
 0x227   : > { %v1650_v30 = vpop.permute.xlu1 %1649 }
 0x228   : > { %1735 = vst.msk [vmem:[#allocation3 + $0x58] sm:$0xff] %vm1723_vm8, %v1650_v30  ;;  %v1841_v21 = vpop.permute.xlu0 %1840 }
 0x229   : > { %1927 = vst.msk [vmem:[#allocation3 + $0x50] sm:$0xff] %vm1916_vm9, %v1841_v21 }
 0x22b   : > { %v1875_v33 = vpop.permute.xlu1 %1874 }
 0x22c   : > { %1944 = vst.msk [vmem:[#allocation3 + $0xd8] sm:$0xff] %vm1916_vm9, %v1875_v33  ;;  %v718_v20 = vpop.permute.xlu0 %717  ;;  %v1976_v39 = vld [vmem:[#allocation3 + $0xd0] sm:$0xff] }
 0x22d   : > { %786 = vst.msk [vmem:[#allocation3 + $0xe0] sm:$0xff] %vm757_vm3, %v718_v20 }
 0x22f   : > { %v1843_v48 = vpop.permute.xlu1 %1842 }
 0x230   : > { %1928 = vst.msk [vmem:[#allocation3 + $0x58] sm:$0xff] %vm1916_vm9, %v1843_v48  ;;  %v911_v44 = vpop.permute.xlu0 %910  ;;  %v1960_v51 = vld [vmem:[#allocation3 + $0x50] sm:$0xff] }
 0x231   : > { %979 = vst.msk [vmem:[#allocation3 + $0xe0] sm:$0xff] %vm950_vm4, %v911_v44 }
 0x233   : > { %v720_v57 = vpop.permute.xlu1 %719  ;;  %v1977_v54 = vld [vmem:[#allocation3 + $0xd8] sm:$0xff] }
 0x234   : > { %787 = vst.msk [vmem:[#allocation3 + $0xe8] sm:$0xff] %vm757_vm3, %v720_v57  ;;  %v2395_v49 = vpack.c.bf16 %v1977_v54, %v1976_v39  ;;  %v879_v3 = vpop.permute.xlu0 %878 }
 0x235   : > { %963 = vst.msk [vmem:[#allocation3 + $0x60] sm:$0xff] %vm950_vm4, %v879_v3 }
 0x236   : > { %2397 = vmatprep.subr.msk.bf16.mxu0 %vm3109_vm11, %v2395_v49 }
 0x237   : > { %v913_v52 = vpop.permute.xlu1 %912  ;;  %v1961_v58 = vld [vmem:[#allocation3 + $0x58] sm:$0xff] }
 0x238   : > { %980 = vst.msk [vmem:[#allocation3 + $0xe8] sm:$0xff] %vm950_vm4, %v913_v52  ;;  %v2398_v15 = vpack.c.bf16 %v1961_v58, %v1960_v51  ;;  %v1104_v10 = vpop.permute.xlu0 %1103 }
 0x239   : > { %1172 = vst.msk [vmem:[#allocation3 + $0xe0] sm:$0xff] %vm1143_vm5, %v1104_v10 }
 0x23a   : > { %2400 = vmatpush3.bf16.xpose.msk.msra.mxu0 %vm3109_vm11, %v2398_v15 }
 0x23b   : > { %v881_v53 = vpop.permute.xlu1 %880 }
 0x23c   : > { %964 = vst.msk [vmem:[#allocation3 + $0x68] sm:$0xff] %vm950_vm4, %v881_v53  ;;  %v1072_v61 = vpop.permute.xlu0 %1071 }
 0x23d   : > { %1156 = vst.msk [vmem:[#allocation3 + $0x60] sm:$0xff] %vm1143_vm5, %v1072_v61 }
 0x23f   : > { %v1106_v32 = vpop.permute.xlu1 %1105 }
 0x240   : > { %1173 = vst.msk [vmem:[#allocation3 + $0xe8] sm:$0xff] %vm1143_vm5, %v1106_v32  ;;  %v1297_v23 = vpop.permute.xlu0 %1296 }
 0x241   : > { %1365 = vst.msk [vmem:[#allocation3 + $0xe0] sm:$0xff] %vm1336_vm6, %v1297_v23 }
 0x243   : > { %v1074_v26 = vpop.permute.xlu1 %1073 }
 0x244   : > { %1157 = vst.msk [vmem:[#allocation3 + $0x68] sm:$0xff] %vm1143_vm5, %v1074_v26  ;;  %v1265_v16 = vpop.permute.xlu0 %1264 }
 0x245   : > { %1349 = vst.msk [vmem:[#allocation3 + $0x60] sm:$0xff] %vm1336_vm6, %v1265_v16 }
 0x247   : > { %v1299_v17 = vpop.permute.xlu1 %1298 }
 0x248   : > { %1366 = vst.msk [vmem:[#allocation3 + $0xe8] sm:$0xff] %vm1336_vm6, %v1299_v17  ;;  %v1491_v25 = vpop.permute.xlu0 %1490 }
 0x249   : > { %1559 = vst.msk [vmem:[#allocation3 + $0xe0] sm:$0xff] %vm1530_vm7, %v1491_v25 }
 0x24b   : > { %v1267_v62 = vpop.permute.xlu1 %1266 }
 0x24c   : > { %1350 = vst.msk [vmem:[#allocation3 + $0x68] sm:$0xff] %vm1336_vm6, %v1267_v62  ;;  %v1459_v31 = vpop.permute.xlu0 %1458 }
 0x24d   : > { %1543 = vst.msk [vmem:[#allocation3 + $0x60] sm:$0xff] %vm1530_vm7, %v1459_v31 }
 0x24f   : > { %v1493_v41 = vpop.permute.xlu1 %1492 }
 0x250   : > { %1560 = vst.msk [vmem:[#allocation3 + $0xe8] sm:$0xff] %vm1530_vm7, %v1493_v41  ;;  %v1684_v42 = vpop.permute.xlu0 %1683 }
 0x251   : > { %1752 = vst.msk [vmem:[#allocation3 + $0xe0] sm:$0xff] %vm1723_vm8, %v1684_v42 }
 0x253   : > { %v1461_v6 = vpop.permute.xlu1 %1460 }
 0x254   : > { %1544 = vst.msk [vmem:[#allocation3 + $0x68] sm:$0xff] %vm1530_vm7, %v1461_v6  ;;  %v1652_v27 = vpop.permute.xlu0 %1651 }
 0x255   : > { %1736 = vst.msk [vmem:[#allocation3 + $0x60] sm:$0xff] %vm1723_vm8, %v1652_v27 }
 0x257   : > { %v1686_v47 = vpop.permute.xlu1 %1685 }
 0x258   : > { %1753 = vst.msk [vmem:[#allocation3 + $0xe8] sm:$0xff] %vm1723_vm8, %v1686_v47  ;;  %v1877_v11 = vpop.permute.xlu0 %1876 }
 0x259   : > { %1945 = vst.msk [vmem:[#allocation3 + $0xe0] sm:$0xff] %vm1916_vm9, %v1877_v11 }
 0x25b   : > { %v1654_v13 = vpop.permute.xlu1 %1653 }
 0x25c   : > { %1737 = vst.msk [vmem:[#allocation3 + $0x68] sm:$0xff] %vm1723_vm8, %v1654_v13  ;;  %v1845_v38 = vpop.permute.xlu0 %1844 }
 0x25d   : > { %1929 = vst.msk [vmem:[#allocation3 + $0x60] sm:$0xff] %vm1916_vm9, %v1845_v38 }
 0x25f   : > { %v1879_v59 = vpop.permute.xlu1 %1878 }
 0x260   : > { %1946 = vst.msk [vmem:[#allocation3 + $0xe8] sm:$0xff] %vm1916_vm9, %v1879_v59  ;;  %v722_v12 = vpop.permute.xlu0 %721  ;;  %v1978_v40 = vld [vmem:[#allocation3 + $0xe0] sm:$0xff] }
 0x261   : > { %788 = vst.msk [vmem:[#allocation3 + $0xf0] sm:$0xff] %vm757_vm3, %v722_v12 }
 0x263   : > { %v1847_v18 = vpop.permute.xlu1 %1846 }
 0x264   : > { %1930 = vst.msk [vmem:[#allocation3 + $0x68] sm:$0xff] %vm1916_vm9, %v1847_v18  ;;  %v915_v43 = vpop.permute.xlu0 %914  ;;  %v1962_v28 = vld [vmem:[#allocation3 + $0x60] sm:$0xff] }
 0x265   : > { %981 = vst.msk [vmem:[#allocation3 + $0xf0] sm:$0xff] %vm950_vm4, %v915_v43 }
 0x267   : > { %v724_v2 = vpop.permute.xlu1 %723  ;;  %v1979_v63 = vld [vmem:[#allocation3 + $0xe8] sm:$0xff] }
 0x268   : > { %789 = vst.msk [vmem:[#allocation3 + $0xf8] sm:$0xff] %vm757_vm3, %v724_v2  ;;  %v2401_v5 = vpack.c.bf16 %v1979_v63, %v1978_v40  ;;  %v883_v9 = vpop.permute.xlu0 %882 }
 0x269   : > { %965 = vst.msk [vmem:[#allocation3 + $0x70] sm:$0xff] %vm950_vm4, %v883_v9 }
 0x26a   : > { %2403 = vmatprep.subr.msk.bf16.mxu0 %vm3109_vm11, %v2401_v5 }
 0x26b   : > { %v917_v29 = vpop.permute.xlu1 %916  ;;  %v1963_v35 = vld [vmem:[#allocation3 + $0x68] sm:$0xff] }
 0x26c   : > { %982 = vst.msk [vmem:[#allocation3 + $0xf8] sm:$0xff] %vm950_vm4, %v917_v29  ;;  %v2404_v24 = vpack.c.bf16 %v1963_v35, %v1962_v28  ;;  %v1108_v0 = vpop.permute.xlu0 %1107 }
 0x26d   : > { %1174 = vst.msk [vmem:[#allocation3 + $0xf0] sm:$0xff] %vm1143_vm5, %v1108_v0 }
 0x26e   : > { %2406 = vmatpush3.bf16.xpose.msk.msra.mxu0 %vm3109_vm11, %v2404_v24 }
 0x26f   : > { %v885_v36 = vpop.permute.xlu1 %884 }
 0x270   : > { %966 = vst.msk [vmem:[#allocation3 + $0x78] sm:$0xff] %vm950_vm4, %v885_v36  ;;  %v1076_v37 = vpop.permute.xlu0 %1075 }
 0x271   : > { %1158 = vst.msk [vmem:[#allocation3 + $0x70] sm:$0xff] %vm1143_vm5, %v1076_v37 }
 0x273   : > { %v1110_v45 = vpop.permute.xlu1 %1109 }
 0x274   : > { %1175 = vst.msk [vmem:[#allocation3 + $0xf8] sm:$0xff] %vm1143_vm5, %v1110_v45  ;;  %v1301_v50 = vpop.permute.xlu0 %1300 }
 0x275   : > { %1367 = vst.msk [vmem:[#allocation3 + $0xf0] sm:$0xff] %vm1336_vm6, %v1301_v50 }
 0x277   : > { %v1078_v4 = vpop.permute.xlu1 %1077 }
 0x278   : > { %1159 = vst.msk [vmem:[#allocation3 + $0x78] sm:$0xff] %vm1143_vm5, %v1078_v4  ;;  %v1269_v46 = vpop.permute.xlu0 %1268 }
 0x279   : > { %1351 = vst.msk [vmem:[#allocation3 + $0x70] sm:$0xff] %vm1336_vm6, %v1269_v46 }
 0x27b   : > { %v1303_v7 = vpop.permute.xlu1 %1302 }
 0x27c   : > { %1368 = vst.msk [vmem:[#allocation3 + $0xf8] sm:$0xff] %vm1336_vm6, %v1303_v7  ;;  %v1495_v1 = vpop.permute.xlu0 %1494 }
 0x27d   : > { %1561 = vst.msk [vmem:[#allocation3 + $0xf0] sm:$0xff] %vm1530_vm7, %v1495_v1 }
 0x27f   : > { %v1271_v34 = vpop.permute.xlu1 %1270 }
 0x280   : > { %1352 = vst.msk [vmem:[#allocation3 + $0x78] sm:$0xff] %vm1336_vm6, %v1271_v34  ;;  %v1463_v55 = vpop.permute.xlu0 %1462 }
 0x281   : > { %1545 = vst.msk [vmem:[#allocation3 + $0x70] sm:$0xff] %vm1530_vm7, %v1463_v55 }
 0x283   : > { %v1497_v8 = vpop.permute.xlu1 %1496 }
 0x284   : > { %1562 = vst.msk [vmem:[#allocation3 + $0xf8] sm:$0xff] %vm1530_vm7, %v1497_v8  ;;  %v1688_v22 = vpop.permute.xlu0 %1687 }
 0x285   : > { %1754 = vst.msk [vmem:[#allocation3 + $0xf0] sm:$0xff] %vm1723_vm8, %v1688_v22 }
 0x287   : > { %v1465_v19 = vpop.permute.xlu1 %1464 }
 0x288   : > { %1546 = vst.msk [vmem:[#allocation3 + $0x78] sm:$0xff] %vm1530_vm7, %v1465_v19  ;;  %v1656_v56 = vpop.permute.xlu0 %1655 }
 0x289   : > { %1738 = vst.msk [vmem:[#allocation3 + $0x70] sm:$0xff] %vm1723_vm8, %v1656_v56 }
 0x28b   : > { %v1690_v30 = vpop.permute.xlu1 %1689 }
 0x28c   : > { %1755 = vst.msk [vmem:[#allocation3 + $0xf8] sm:$0xff] %vm1723_vm8, %v1690_v30  ;;  %v1881_v21 = vpop.permute.xlu0 %1880 }
 0x28d   : > { %1947 = vst.msk [vmem:[#allocation3 + $0xf0] sm:$0xff] %vm1916_vm9, %v1881_v21 }
 0x28f   : > { %v1658_v33 = vpop.permute.xlu1 %1657 }
 0x290   : > { %1739 = vst.msk [vmem:[#allocation3 + $0x78] sm:$0xff] %vm1723_vm8, %v1658_v33  ;;  %v1849_v20 = vpop.permute.xlu0 %1848 }
 0x291   : > { %1931 = vst.msk [vmem:[#allocation3 + $0x70] sm:$0xff] %vm1916_vm9, %v1849_v20 }
 0x293   : > { %v1883_v48 = vpop.permute.xlu1 %1882 }
 0x294   : > { %1948 = vst.msk [vmem:[#allocation3 + $0xf8] sm:$0xff] %vm1916_vm9, %v1883_v48  ;;  %v1980_v44 = vld [vmem:[#allocation3 + $0xf0] sm:$0xff] }
 0x297   : > { %v1851_v39 = vpop.permute.xlu1 %1850 }
 0x298   : > { %1932 = vst.msk [vmem:[#allocation3 + $0x78] sm:$0xff] %vm1916_vm9, %v1851_v39  ;;  %v1964_v49 = vld [vmem:[#allocation3 + $0x70] sm:$0xff] }
 0x29b   : > { %v1981_v57 = vld [vmem:[#allocation3 + $0xf8] sm:$0xff] }
 0x29c   : > { %v2407_v54 = vpack.c.bf16 %v1981_v57, %v1980_v44 }
 0x29e   : > { %2409 = vmatprep.subr.msk.bf16.mxu0 %vm3109_vm11, %v2407_v54 }
 0x29f   : > { %v1965_v51 = vld [vmem:[#allocation3 + $0x78] sm:$0xff] }
 0x2a0   : > { %v2410_v3 = vpack.c.bf16 %v1965_v51, %v1964_v49 }
 0x2a2   : > { %2412 = vmatpush3.bf16.xpose.msk.msra.mxu0 %vm3109_vm11, %v2410_v3 }
 0x2a9   : > { %2364 = vmatmul.mubr.msk.f32.vlgmr.msra.gmra.mrb[0].mxu0 %vm1982_vm10, %v3437_v14 }
 0x37c   : > { %v2148_v52 = vpop.f32.mrb[0].mxu0 }
 0x37d   : > { %v2160_v58 = vmul.f32 %v2148_v52, %v2148_v52  ;;  %v2150_v15 = vpop.f32.mrb[1].mxu0  ;;  %2153 = vst [vmem:[%s210_s9] sm:$0xff] %v2148_v52 }
 0x37e   : > { %2154 = vst [vmem:[%s210_s9 + $0x8] sm:$0xff] %v2150_v15  ;;  %v2155_v10 = vadd.f32 %v2150_v15, %v2148_v52  ;;  %v2161_v53 = vmul.f32 %v2150_v15, %v2150_v15 }
 0x380   : > { %v2162_v61 = vadd.f32 %v2161_v53, %v2160_v58  ;;  %2156 = vadd.xlane.f32.xlu0 %v2155_v10 }
 0x382   : > { %2163 = vadd.xlane.f32.xlu1 %v2162_v61 }
 0x40d   : > { %v2157_v60 = vpop.xlane.xlu0 %2156 }
 0x40e   : > { %2159 = vst.msk [vmem:[%s214_s13] sm:$0xff] %vm2158_vm12, %v2157_v60 }
 0x40f   : > { %v2164_v14 = vpop.xlane.xlu1 %2163 }
 0x410   : > { %2165 = vst.msk [vmem:[%s218_s18] sm:$0xff] %vm2158_vm12, %v2164_v14 }
 0x411 PF: > { %s15_s15 = sadd.s32 1, %s2436_s15  }
 0x412   : > { %p12_p4 = scmp.ge.s32.totalorder %s15_s15, 4  }
 0x414   :  { %14 = sbr.rel (!%p12_p4) target bundleno = 1 (0x1), region = 84 }

</bundles_post_ra>
